<compile_context>
chip_gen: v7x
topology: tpu7x:2x2x1
jax: 0.10.0
libtpu: 0.0.40
codegen_flags: <defaults>
</compile_context>

<pallas_src>
import jax
import jax.numpy as jnp
from jax.experimental import pallas as pl
from jax.experimental.pallas import tpu as pltpu

SN_EPS = 1e-4   # l2normalize eps in the PyTorch module


def _spectral_normalize(w, u, eps=SN_EPS):
    """One power-iteration spectral norm (tiny; hoisted out of the hot kernel)."""
    w = w.astype(jnp.float32)
    u = u.astype(jnp.float32)
    v = w.T @ u
    v = v / (jnp.linalg.norm(v) + eps)
    wv = w @ v
    u_new = wv / (jnp.linalg.norm(wv) + eps)
    sigma = jnp.dot(u_new, wv)
    return w / sigma


def _self_attention_kernel(x_ref, x4_ref, wt_ref, wp_ref, wg_ref, wo_ref,
                           gamma_ref, out_ref, phi_sc, g_sc):
    """Grid = (B, N // TILE_N).

    x_ref    : (1, C, TILE_N)   query tile of x (channels x flattened spatial)
    x4_ref   : (1, 4, C, M)     full batch item in 2x2-pool-window layout, M = N/4
    w*_ref   : spectrally-normalized projection weights (whole arrays in VMEM)
    gamma_ref: (1, 1) scalar in SMEM
    phi_sc   : (C/8, M) VMEM scratch — pooled phi projection of current batch item
    g_sc     : (C/2, M) VMEM scratch — pooled g   projection of current batch item
    """
    qt = pl.program_id(1)

    # Compute pooled key/value projections once per batch item and keep them
    # resident in VMEM scratch for all query tiles of that item.
    @pl.when(qt == 0)
    def _():
        wp = wp_ref[...]                                   # (C8, C)
        wg = wg_ref[...]                                   # (C2, C)
        phi = jnp.dot(wp, x4_ref[0, 0], preferred_element_type=jnp.float32)
        gpr = jnp.dot(wg, x4_ref[0, 0], preferred_element_type=jnp.float32)
        for q in range(1, 4):   # maxpool2x2 == max over the 4 window positions
            xq = x4_ref[0, q]                              # (C, M)
            phi = jnp.maximum(
                phi, jnp.dot(wp, xq, preferred_element_type=jnp.float32))
            gpr = jnp.maximum(
                gpr, jnp.dot(wg, xq, preferred_element_type=jnp.float32))
        phi_sc[...] = phi
        g_sc[...] = gpr

    x_t = x_ref[0]                                                        # (C, T)
    theta = jnp.dot(wt_ref[...], x_t,
                    preferred_element_type=jnp.float32)                   # (C8, T)

    # scores[n, m] = sum_c theta[c, n] * phi[c, m]
    scores = jnp.einsum('cn,cm->nm', theta, phi_sc[...],
                        preferred_element_type=jnp.float32)               # (T, M)
    scores = scores - jnp.max(scores, axis=-1, keepdims=True)
    e = jnp.exp(scores)
    attn = e / jnp.sum(e, axis=-1, keepdims=True)

    # attn_g[c, n] = sum_m g[c, m] * attn[n, m]
    attn_g = jnp.einsum('cm,nm->cn', g_sc[...], attn,
                        preferred_element_type=jnp.float32)               # (C2, T)
    o = jnp.dot(wo_ref[...], attn_g,
                preferred_element_type=jnp.float32)                       # (C, T)

    out_ref[0] = gamma_ref[0, 0] * o + x_t


def self_attention(x, w_theta, u_theta, w_phi, u_phi, w_g, u_g, w_o, u_o,
                   gamma, *, tile_n=None):
    """x: (B, C, W, H) NCHW float32; 1x1-conv weights as 2D (out_ch, in_ch)."""
    B, C, W, H = x.shape
    assert C % 8 == 0 and W % 2 == 0 and H % 2 == 0
    N = W * H
    M = N // 4
    C8, C2 = C // 8, C // 2

    # Spectral normalization (tiny power iterations) hoisted out of the kernel.
    wt = _spectral_normalize(w_theta, u_theta)   # (C8, C)
    wp = _spectral_normalize(w_phi, u_phi)       # (C8, C)
    wg = _spectral_normalize(w_g, u_g)           # (C2, C)
    wo = _spectral_normalize(w_o, u_o)           # (C, C2)

    if tile_n is None:
        tile_n = N
        for cand in (2048, 1024, 512, 256, 128):
            if N % cand == 0:
                tile_n = cand
                break
    assert N % tile_n == 0
    # TODO(synk): pad the spatial axis to a multiple of 128 for shapes where
    # N has no lane-dense divisor (not needed for the shapes exercised here).

    xf = x.astype(jnp.float32)
    x_cn = xf.reshape(B, C, N)                               # lanes = spatial
    # 2x2-pool-window layout: x4[b, q, c, m] = x[b, c, 2*w2 + q//2, 2*h2 + q%2],
    # m = w2*(H//2) + h2  (matches PyTorch's .view() flattening after MaxPool2d).
    x4 = (xf.reshape(B, C, W // 2, 2, H // 2, 2)
            .transpose(0, 3, 5, 1, 2, 4)
            .reshape(B, 4, C, M))
    gamma_arr = jnp.asarray(gamma, jnp.float32).reshape(1, 1)

    vmem_whole = pl.BlockSpec(memory_space=pltpu.MemorySpace.VMEM)
    grid = (B, N // tile_n)

    out = pl.pallas_call(
        _self_attention_kernel,
        out_shape=jax.ShapeDtypeStruct((B, C, N), jnp.float32),
        grid_spec=pltpu.PrefetchScalarGridSpec(
            num_scalar_prefetch=0,
            grid=grid,
            in_specs=[
                pl.BlockSpec((1, C, tile_n), lambda b, qt: (b, 0, qt)),   # x
                pl.BlockSpec((1, 4, C, M), lambda b, qt: (b, 0, 0, 0)),   # x4
                vmem_whole,   # W_theta
                vmem_whole,   # W_phi
                vmem_whole,   # W_g
                vmem_whole,   # W_o
                pl.BlockSpec(memory_space=pltpu.MemorySpace.SMEM),        # gamma
            ],
            out_specs=pl.BlockSpec((1, C, tile_n), lambda b, qt: (b, 0, qt)),
            scratch_shapes=[pltpu.VMEM((C8, M), jnp.float32),
                            pltpu.VMEM((C2, M), jnp.float32)],
        ),
        compiler_params=pltpu.CompilerParams(
            dimension_semantics=("parallel", "arbitrary")),
    )(x_cn, x4, wt, wp, wg, wo, gamma_arr)
    return out.reshape(B, C, W, H)


# ----------------------- pure-JAX reference (for checking) -----------------------
def _reference(x, w_theta, u_theta, w_phi, u_phi, w_g, u_g, w_o, u_o, gamma):
    B, C, W, H = x.shape
    N = W * H

    def sn(w, u):
        v = w.T @ u
        v = v / (jnp.linalg.norm(v) + SN_EPS)
        wv = w @ v
        u2 = wv / (jnp.linalg.norm(wv) + SN_EPS)
        sigma = u2 @ wv
        return w / sigma

    def conv1x1(w, t):
        return jnp.einsum('oc,bcwh->bowh', w, t)

    def pool(t):
        b, c, ww, hh = t.shape
        return t.reshape(b, c, ww // 2, 2, hh // 2, 2).max(axis=(3, 5))

    wt, wp = sn(w_theta, u_theta), sn(w_phi, u_phi)
    wg, wo = sn(w_g, u_g), sn(w_o, u_o)

    theta = conv1x1(wt, x).reshape(B, -1, N)                       # (B, C8, N)
    phi = pool(conv1x1(wp, x)).reshape(B, -1, N // 4)              # (B, C8, M)
    att = jax.nn.softmax(jnp.einsum('bcn,bcm->bnm', theta, phi), axis=-1)
    g = pool(conv1x1(wg, x)).reshape(B, -1, N // 4)                # (B, C2, M)
    attn_g = jnp.einsum('bcm,bnm->bcn', g, att).reshape(B, -1, W, H)
    out = conv1x1(wo, attn_g)
    return gamma * out + x


if __name__ == "__main__":
    B, C, W, H = 2, 64, 16, 16        # batch, in_dim, spatial, spatial
    C8, C2 = C // 8, C // 2

    key = jax.random.PRNGKey(0)
    ks = jax.random.split(key, 10)
    x = jax.random.normal(ks[0], (B, C, W, H), dtype=jnp.float32)

    def conv_w(k, cout, cin):          # Conv2d(k=1, bias=False) weight, as (out, in)
        bound = 1.0 / jnp.sqrt(cin)
        return jax.random.uniform(k, (cout, cin), jnp.float32, -bound, bound)

    def sn_u(k, cout):                 # SpectralNorm u: normal then l2-normalized
        u = jax.random.normal(k, (cout,), dtype=jnp.float32)
        return u / (jnp.linalg.norm(u) + SN_EPS)

    w_theta, u_theta = conv_w(ks[1], C8, C), sn_u(ks[2], C8)
    w_phi, u_phi = conv_w(ks[3], C8, C), sn_u(ks[4], C8)
    w_g, u_g = conv_w(ks[5], C2, C), sn_u(ks[6], C2)
    w_o, u_o = conv_w(ks[7], C, C2), sn_u(ks[8], C)
    # torch inits gamma to 0 (which would bypass the attention path); use a
    # nonzero value so the full computation is exercised and checked.
    gamma = jnp.full((1,), 0.8, dtype=jnp.float32)

    out = self_attention(x, w_theta, u_theta, w_phi, u_phi, w_g, u_g,
                         w_o, u_o, gamma, tile_n=128)
    out = jax.block_until_ready(out)

    ref = _reference(x, w_theta, u_theta, w_phi, u_phi, w_g, u_g, w_o, u_o, gamma)
    assert out.shape == (B, C, W, H)
    err = float(jnp.max(jnp.abs(out - ref)))
    assert jnp.allclose(out, ref, atol=1e-3, rtol=1e-3), err

    print("KERNEL_OK")
</pallas_src>

<mosaic_0001>
module attributes {stable_mosaic.version = 11 : i64} {
  func.func @_self_attention_kernel(%arg0: i32, %arg1: i32, %arg2: memref<1x64x128xf32, #tpu.memory_space<vmem>>, %arg3: memref<1x4x64x64xf32, #tpu.memory_space<vmem>>, %arg4: memref<8x64xf32, #tpu.memory_space<vmem>>, %arg5: memref<8x64xf32, #tpu.memory_space<vmem>>, %arg6: memref<32x64xf32, #tpu.memory_space<vmem>>, %arg7: memref<64x32xf32, #tpu.memory_space<vmem>>, %arg8: memref<1x1xf32, #tpu.memory_space<smem>>, %arg9: memref<1x64x128xf32, #tpu.memory_space<vmem>>, %arg10: memref<8x64xf32, #tpu.memory_space<vmem>>, %arg11: memref<32x64xf32, #tpu.memory_space<vmem>>) attributes {dimension_semantics = [#tpu.dimension_semantics<parallel>, #tpu.dimension_semantics<arbitrary>], iteration_bounds = array<i64: 2, 2>, scalar_prefetch = 0 : i64, scratch_operands = 2 : i64, tpu.core_type = #tpu.core_type<tc>, window_params = [{transform_indices = @transform_0, window_bounds = array<i64: 1, 64, 128>}, {transform_indices = @transform_1, window_bounds = array<i64: 1, 4, 64, 64>}, {pipeline_mode = #tpu.pipeline_mode<synchronous>, transform_indices = @transform_2, window_bounds = array<i64: 8, 64>}, {pipeline_mode = #tpu.pipeline_mode<synchronous>, transform_indices = @transform_3, window_bounds = array<i64: 8, 64>}, {pipeline_mode = #tpu.pipeline_mode<synchronous>, transform_indices = @transform_4, window_bounds = array<i64: 32, 64>}, {pipeline_mode = #tpu.pipeline_mode<synchronous>, transform_indices = @transform_5, window_bounds = array<i64: 64, 32>}, {transform_indices = @transform_6, window_bounds = array<i64: 1, 1>}, {transform_indices = @transform_7, window_bounds = array<i64: 1, 64, 128>}]} {
    %c0_i32 = arith.constant 0 : i32
    %0 = arith.cmpi eq, %arg1, %c0_i32 : i32
    %1 = arith.extui %0 : i1 to i32
    %c0_i32_0 = arith.constant 0 : i32
    %2 = arith.cmpi ne, %1, %c0_i32_0 : i32
    scf.if %2 {
      %c0_21 = arith.constant 0 : index
      %c0_22 = arith.constant 0 : index
      %29 = vector.load %arg5[%c0_21, %c0_22] : memref<8x64xf32, #tpu.memory_space<vmem>>, vector<8x64xf32>
      %c0_23 = arith.constant 0 : index
      %c0_24 = arith.constant 0 : index
      %30 = vector.load %arg6[%c0_23, %c0_24] : memref<32x64xf32, #tpu.memory_space<vmem>>, vector<32x64xf32>
      %c0_25 = arith.constant 0 : index
      %c0_26 = arith.constant 0 : index
      %c0_27 = arith.constant 0 : index
      %c0_28 = arith.constant 0 : index
      %31 = vector.load %arg3[%c0_25, %c0_26, %c0_27, %c0_28] : memref<1x4x64x64xf32, #tpu.memory_space<vmem>>, vector<1x1x64x64xf32>
      %32 = vector.shape_cast %31 : vector<1x1x64x64xf32> to vector<64x64xf32>
      %cst_29 = arith.constant dense<0.000000e+00> : vector<8x64xf32>
      %33 = tpu.matmul %29, %32, %cst_29 {dimension_numbers = #tpu.dot_dimension_numbers<[1], [0], [0], [1], [0, 0, 1, 1], [], []>} : vector<8x64xf32>, vector<64x64xf32>, vector<8x64xf32> -> vector<8x64xf32>
      %c0_30 = arith.constant 0 : index
      %c0_31 = arith.constant 0 : index
      %c0_32 = arith.constant 0 : index
      %c0_33 = arith.constant 0 : index
      %34 = vector.load %arg3[%c0_30, %c0_31, %c0_32, %c0_33] : memref<1x4x64x64xf32, #tpu.memory_space<vmem>>, vector<1x1x64x64xf32>
      %35 = vector.shape_cast %34 : vector<1x1x64x64xf32> to vector<64x64xf32>
      %cst_34 = arith.constant dense<0.000000e+00> : vector<32x64xf32>
      %36 = tpu.matmul %30, %35, %cst_34 {dimension_numbers = #tpu.dot_dimension_numbers<[1], [0], [0], [1], [0, 0, 1, 1], [], []>} : vector<32x64xf32>, vector<64x64xf32>, vector<32x64xf32> -> vector<32x64xf32>
      %c0_35 = arith.constant 0 : index
      %c1 = arith.constant 1 : index
      %c0_36 = arith.constant 0 : index
      %c0_37 = arith.constant 0 : index
      %37 = vector.load %arg3[%c0_35, %c1, %c0_36, %c0_37] : memref<1x4x64x64xf32, #tpu.memory_space<vmem>>, vector<1x1x64x64xf32>
      %38 = vector.shape_cast %37 : vector<1x1x64x64xf32> to vector<64x64xf32>
      %cst_38 = arith.constant dense<0.000000e+00> : vector<8x64xf32>
      %39 = tpu.matmul %29, %38, %cst_38 {dimension_numbers = #tpu.dot_dimension_numbers<[1], [0], [0], [1], [0, 0, 1, 1], [], []>} : vector<8x64xf32>, vector<64x64xf32>, vector<8x64xf32> -> vector<8x64xf32>
      %40 = arith.maximumf %33, %39 : vector<8x64xf32>
      %cst_39 = arith.constant dense<0.000000e+00> : vector<32x64xf32>
      %41 = tpu.matmul %30, %38, %cst_39 {dimension_numbers = #tpu.dot_dimension_numbers<[1], [0], [0], [1], [0, 0, 1, 1], [], []>} : vector<32x64xf32>, vector<64x64xf32>, vector<32x64xf32> -> vector<32x64xf32>
      %42 = arith.maximumf %36, %41 : vector<32x64xf32>
      %c0_40 = arith.constant 0 : index
      %c2 = arith.constant 2 : index
      %c0_41 = arith.constant 0 : index
      %c0_42 = arith.constant 0 : index
      %43 = vector.load %arg3[%c0_40, %c2, %c0_41, %c0_42] : memref<1x4x64x64xf32, #tpu.memory_space<vmem>>, vector<1x1x64x64xf32>
      %44 = vector.shape_cast %43 : vector<1x1x64x64xf32> to vector<64x64xf32>
      %cst_43 = arith.constant dense<0.000000e+00> : vector<8x64xf32>
      %45 = tpu.matmul %29, %44, %cst_43 {dimension_numbers = #tpu.dot_dimension_numbers<[1], [0], [0], [1], [0, 0, 1, 1], [], []>} : vector<8x64xf32>, vector<64x64xf32>, vector<8x64xf32> -> vector<8x64xf32>
      %46 = arith.maximumf %40, %45 : vector<8x64xf32>
      %cst_44 = arith.constant dense<0.000000e+00> : vector<32x64xf32>
      %47 = tpu.matmul %30, %44, %cst_44 {dimension_numbers = #tpu.dot_dimension_numbers<[1], [0], [0], [1], [0, 0, 1, 1], [], []>} : vector<32x64xf32>, vector<64x64xf32>, vector<32x64xf32> -> vector<32x64xf32>
      %48 = arith.maximumf %42, %47 : vector<32x64xf32>
      %c0_45 = arith.constant 0 : index
      %c3 = arith.constant 3 : index
      %c0_46 = arith.constant 0 : index
      %c0_47 = arith.constant 0 : index
      %49 = vector.load %arg3[%c0_45, %c3, %c0_46, %c0_47] : memref<1x4x64x64xf32, #tpu.memory_space<vmem>>, vector<1x1x64x64xf32>
      %50 = vector.shape_cast %49 : vector<1x1x64x64xf32> to vector<64x64xf32>
      %cst_48 = arith.constant dense<0.000000e+00> : vector<8x64xf32>
      %51 = tpu.matmul %29, %50, %cst_48 {dimension_numbers = #tpu.dot_dimension_numbers<[1], [0], [0], [1], [0, 0, 1, 1], [], []>} : vector<8x64xf32>, vector<64x64xf32>, vector<8x64xf32> -> vector<8x64xf32>
      %52 = arith.maximumf %46, %51 : vector<8x64xf32>
      %cst_49 = arith.constant dense<0.000000e+00> : vector<32x64xf32>
      %53 = tpu.matmul %30, %50, %cst_49 {dimension_numbers = #tpu.dot_dimension_numbers<[1], [0], [0], [1], [0, 0, 1, 1], [], []>} : vector<32x64xf32>, vector<64x64xf32>, vector<32x64xf32> -> vector<32x64xf32>
      %54 = arith.maximumf %48, %53 : vector<32x64xf32>
      %c0_50 = arith.constant 0 : index
      %c0_51 = arith.constant 0 : index
      %55 = vector.load %arg10[%c0_50, %c0_51] : memref<8x64xf32, #tpu.memory_space<vmem>>, vector<8x64xf32>
      tpu.vector_store %arg10[%c0_50, %c0_51], %52 {strides = array<i32>} : memref<8x64xf32, #tpu.memory_space<vmem>>, vector<8x64xf32>,
      %c0_52 = arith.constant 0 : index
      %c0_53 = arith.constant 0 : index
      %56 = vector.load %arg11[%c0_52, %c0_53] : memref<32x64xf32, #tpu.memory_space<vmem>>, vector<32x64xf32>
      tpu.vector_store %arg11[%c0_52, %c0_53], %54 {strides = array<i32>} : memref<32x64xf32, #tpu.memory_space<vmem>>, vector<32x64xf32>,
    } else {
    }
    %c0 = arith.constant 0 : index
    %c0_1 = arith.constant 0 : index
    %c0_2 = arith.constant 0 : index
    %3 = vector.load %arg2[%c0, %c0_1, %c0_2] : memref<1x64x128xf32, #tpu.memory_space<vmem>>, vector<1x64x128xf32>
    %4 = vector.shape_cast %3 : vector<1x64x128xf32> to vector<64x128xf32>
    %c0_3 = arith.constant 0 : index
    %c0_4 = arith.constant 0 : index
    %5 = vector.load %arg4[%c0_3, %c0_4] : memref<8x64xf32, #tpu.memory_space<vmem>>, vector<8x64xf32>
    %cst = arith.constant dense<0.000000e+00> : vector<8x128xf32>
    %6 = tpu.matmul %5, %4, %cst {dimension_numbers = #tpu.dot_dimension_numbers<[1], [0], [0], [1], [0, 0, 1, 1], [], []>} : vector<8x64xf32>, vector<64x128xf32>, vector<8x128xf32> -> vector<8x128xf32>
    %c0_5 = arith.constant 0 : index
    %c0_6 = arith.constant 0 : index
    %7 = vector.load %arg10[%c0_5, %c0_6] : memref<8x64xf32, #tpu.memory_space<vmem>>, vector<8x64xf32>
    "tpu.trace_start"() <{level = 10 : i32, message = "cn,cm->nm"}> : () -> ()
    %cst_7 = arith.constant dense<0.000000e+00> : vector<128x64xf32>
    %8 = tpu.matmul %6, %7, %cst_7 {dimension_numbers = #tpu.dot_dimension_numbers<[0], [0], [1], [1], [0, 1, 1, 1], [], []>} : vector<8x128xf32>, vector<8x64xf32>, vector<128x64xf32> -> vector<128x64xf32>
    "tpu.trace_stop"() : () -> ()
    %cst_8 = arith.constant dense<0xFF800000> : vector<128xf32>
    %9 = vector.multi_reduction <maximumf>, %8, %cst_8 [1] : vector<128x64xf32> to vector<128xf32>
    %10 = vector.shape_cast %9 : vector<128xf32> to vector<128x1xf32>
    %11 = vector.broadcast %10 : vector<128x1xf32> to vector<128x64xf32>
    %12 = arith.subf %8, %11 : vector<128x64xf32>
    %13 = math.exp %12 : vector<128x64xf32>
    %cst_9 = arith.constant dense<0.000000e+00> : vector<128xf32>
    %14 = vector.multi_reduction <add>, %13, %cst_9 [1] : vector<128x64xf32> to vector<128xf32>
    %15 = vector.shape_cast %14 : vector<128xf32> to vector<128x1xf32>
    %16 = vector.broadcast %15 : vector<128x1xf32> to vector<128x64xf32>
    %17 = arith.divf %13, %16 : vector<128x64xf32>
    %c0_10 = arith.constant 0 : index
    %c0_11 = arith.constant 0 : index
    %18 = vector.load %arg11[%c0_10, %c0_11] : memref<32x64xf32, #tpu.memory_space<vmem>>, vector<32x64xf32>
    "tpu.trace_start"() <{level = 10 : i32, message = "cm,nm->cn"}> : () -> ()
    %cst_12 = arith.constant dense<0.000000e+00> : vector<32x128xf32>
    %19 = tpu.matmul %18, %17, %cst_12 {dimension_numbers = #tpu.dot_dimension_numbers<[1], [1], [0], [0], [0, 0, 1, 0], [], []>} : vector<32x64xf32>, vector<128x64xf32>, vector<32x128xf32> -> vector<32x128xf32>
    "tpu.trace_stop"() : () -> ()
    %c0_13 = arith.constant 0 : index
    %c0_14 = arith.constant 0 : index
    %20 = vector.load %arg7[%c0_13, %c0_14] : memref<64x32xf32, #tpu.memory_space<vmem>>, vector<64x32xf32>
    %cst_15 = arith.constant dense<0.000000e+00> : vector<64x128xf32>
    %21 = tpu.matmul %20, %19, %cst_15 {dimension_numbers = #tpu.dot_dimension_numbers<[1], [0], [0], [1], [0, 0, 1, 1], [], []>} : vector<64x32xf32>, vector<32x128xf32>, vector<64x128xf32> -> vector<64x128xf32>
    %c0_16 = arith.constant 0 : index
    %c0_17 = arith.constant 0 : index
    %22 = memref.load %arg8[%c0_16, %c0_17] : memref<1x1xf32, #tpu.memory_space<smem>>
    %23 = vector.broadcast %22 : f32 to vector<64x128xf32>
    %24 = arith.mulf %23, %21 : vector<64x128xf32>
    %25 = arith.addf %24, %4 : vector<64x128xf32>
    %c0_18 = arith.constant 0 : index
    %c0_19 = arith.constant 0 : index
    %c0_20 = arith.constant 0 : index
    %26 = vector.load %arg9[%c0_18, %c0_19, %c0_20] : memref<1x64x128xf32, #tpu.memory_space<vmem>>, vector<1x64x128xf32>
    %27 = vector.shape_cast %26 : vector<1x64x128xf32> to vector<64x128xf32>
    %28 = vector.shape_cast %25 : vector<64x128xf32> to vector<1x64x128xf32>
    tpu.vector_store %arg9[%c0_18, %c0_19, %c0_20], %28 {strides = array<i32>} : memref<1x64x128xf32, #tpu.memory_space<vmem>>, vector<1x64x128xf32>,
    return
  }
  func.func @transform_0(%arg0: i32, %arg1: i32) -> (i32, i32, i32) {
    %c0_i32 = arith.constant 0 : i32
    %c0_i32_0 = arith.constant 0 : i32
    return %arg0, %c0_i32, %arg1 : i32, i32, i32
  }
  func.func @transform_1(%arg0: i32, %arg1: i32) -> (i32, i32, i32, i32) {
    %c0_i32 = arith.constant 0 : i32
    %c0_i32_0 = arith.constant 0 : i32
    %c0_i32_1 = arith.constant 0 : i32
    %c0_i32_2 = arith.constant 0 : i32
    return %arg0, %c0_i32, %c0_i32_0, %c0_i32_1 : i32, i32, i32, i32
  }
  func.func @transform_2(%arg0: i32, %arg1: i32) -> (i32, i32) {
    %c0_i32 = arith.constant 0 : i32
    %c0_i32_0 = arith.constant 0 : i32
    %c0_i32_1 = arith.constant 0 : i32
    return %c0_i32, %c0_i32_0 : i32, i32
  }
  func.func @transform_3(%arg0: i32, %arg1: i32) -> (i32, i32) {
    %c0_i32 = arith.constant 0 : i32
    %c0_i32_0 = arith.constant 0 : i32
    %c0_i32_1 = arith.constant 0 : i32
    return %c0_i32, %c0_i32_0 : i32, i32
  }
  func.func @transform_4(%arg0: i32, %arg1: i32) -> (i32, i32) {
    %c0_i32 = arith.constant 0 : i32
    %c0_i32_0 = arith.constant 0 : i32
    %c0_i32_1 = arith.constant 0 : i32
    return %c0_i32, %c0_i32_0 : i32, i32
  }
  func.func @transform_5(%arg0: i32, %arg1: i32) -> (i32, i32) {
    %c0_i32 = arith.constant 0 : i32
    %c0_i32_0 = arith.constant 0 : i32
    %c0_i32_1 = arith.constant 0 : i32
    return %c0_i32, %c0_i32_0 : i32, i32
  }
  func.func @transform_6(%arg0: i32, %arg1: i32) -> (i32, i32) {
    %c0_i32 = arith.constant 0 : i32
    %c0_i32_0 = arith.constant 0 : i32
    %c0_i32_1 = arith.constant 0 : i32
    return %c0_i32, %c0_i32_0 : i32, i32
  }
  func.func @transform_7(%arg0: i32, %arg1: i32) -> (i32, i32, i32) {
    %c0_i32 = arith.constant 0 : i32
    %c0_i32_0 = arith.constant 0 : i32
    return %arg0, %c0_i32, %arg1 : i32, i32, i32
  }
}

</mosaic_0001>

<bundles_post_ra>
// kernel: tpu_custom_call.1
= control target key start
LH: loop header
LB: loop body
LE: loop exit
PB: predicated region body
PF: predicated region fallthrough
CT: control target
= control target key end

     0   :  { %s3838_s0 = inlined_call_operand.hbm [shape: f32[2,64,256], index: 0, kind: input, shape index: {}]   ;;  %s3839_s1 = inlined_call_operand.hbm [shape: f32[2,4,64,64], index: 1, kind: input, shape index: {}]   ;;  %s3840_s2 = inlined_call_operand.vmem [shape: f32[8,64], index: 2, kind: input, shape index: {}]   ;;  %s3841_s3 = inlined_call_operand.vmem [shape: f32[8,64], index: 3, kind: input, shape index: {}]   ;;  %s3842_s4 = inlined_call_operand.vmem [shape: f32[32,64], index: 4, kind: input, shape index: {}]   ;;  %s3843_s5 = inlined_call_operand.vmem [shape: f32[64,32], index: 5, kind: input, shape index: {}]   ;;  %s3844_s6 = inlined_call_operand.<no memory space> [shape: f32[1,1], index: 6, kind: input, shape index: {}]   ;;  %s3845_s7 = inlined_call_operand.hbm [shape: f32[2,64,256], index: 7, kind: output, shape index: {}]  }
   0x1   :  { %3861 = sst [smem:[#allocation19_spill]] %s3843_s5 }
   0x2   :  { %3862 = sst [smem:[#allocation20_spill]] %s3845_s7 }
   0x3   :  { %12 = sst [smem:[#allocation4]] %s3844_s6 }
   0x4   :  { %13 = vsyncpa [#allocation6], 0 }
   0x5   :  { %15 = vsyncpa [#allocation6 + $0x1], 0 }
   0x6   :  { %16 = vsyncpa [#allocation9], 0 }
   0x7   :  { %18 = vsyncpa [#allocation9 + $0x1], 0 }
   0x8   :  { %19 = vsyncpa [#allocation7], 0 }
   0x9   :  { %21 = vsyncpa [#allocation7 + $0x1], 0  ;;  %s3108_s26 = smov 0   ;;  %s3110_s27 = smov 0  }
   0xa   :  { %s3112_s28 = smov 0   ;;  %s3114_s29 = smov 0  }
   0xb   :  { %s3116_s30 = smov 0   ;;  %s3118_s8 = smov 0  }
   0xc   :  { %s3120_s9 = smov 0   ;;  %s3122_s6 = smov 0  }
   0xd   :  { %s3124_s10 = smov 0   ;;  %s3126_s11 = smov 0  }
   0xe   :  { %s3128_s12 = smov 0  }
   0xf LB: > { %3863 = sst [smem:[#allocation14_spill]] %s3036_s6  ;;  %s3846_s13 = sadd.s32 4294967295, %s3048_s12   ;;  %s3048_s12 = sphi %s3128_s12, %s27_s12   ;;  %s3044_s11 = sphi %s3126_s11, %s3905_s11   ;;  %s3040_s10 = sphi %s3124_s10, %s3904_s10   ;;  %s3036_s6 = sphi %s3122_s6, %s3903_s6   ;;  %s3032_s9 = sphi %s3120_s9, %s3902_s9   ;;  %s3028_s8 = sphi %s3118_s8, %s3901_s8   ;;  %s3024_s30 = sphi %s3116_s30, %s3900_s30   ;;  %s3020_s29 = sphi %s3114_s29, %s3899_s29   ;;  %s3016_s28 = sphi %s3112_s28, %s3898_s28   ;;  %s3012_s27 = sphi %s3110_s27, %s3897_s27   ;;  %s3008_s26 = sphi %s3108_s26, %s3896_s26  }
  0x10   : > { %s1981_s14 = sadd.s32 4294967294, %s3048_s12   ;;  %s36_s15 = sadd.s32 1, %s3040_s10 }
  0x11   : > { %s39_s16 = sadd.s32 1, %s3044_s11  ;;  %p37_p0 = scmp.ge.s32.totalorder %s36_s15, 2 }
  0x12   : > { %s48_s17 = sadd.s32 1, %s3028_s8  ;;  %p55_p1 = scmp.ne.s32.totalorder %s3028_s8, %s3024_s30 }
  0x13   : > { %p3855_p2 = scmp.eq.s32.totalorder %s3048_s12, 0  ;;  %s3907_s15 = smov (%p37_p0, %s36_s15), 0 }
  0x14   : > { %3864 = sst [smem:[#allocation15_spill]] %s3907_s15  ;;  %s3909_s16 = smov (!%p37_p0, %s39_s16), %s3044_s11 }
  0x15   : > { %s44_s18 = ssub.s32 %s3040_s10, %s3907_s15  ;;  %p3178_p3 = por %p3855_p2, %p55_p1 }
  0x16   : > { %p41_p4 = scmp.ge.s32.totalorder %s3909_s16, 2  ;;  %p3856_p5 = scmp.ne.s32.totalorder %s3024_s30, %s3020_s29 }
  0x17   : > { %p218_p6 = scmp.eq.s32.totalorder %s3846_s13, 3  ;;  %p224_p7 = scmp.eq.s32.totalorder %s1981_s14, 3 }
  0x18   : > { %s3911_s16 = smov (%p41_p4, %s3909_s16), 0  ;;  %p3854_p12 = scmp.lt.s32.totalorder %s3048_s12, 4 }
  0x19   : > { %3866 = sst [smem:[#allocation16_spill]] %s3911_s16  ;;  %p3188_p8 = por %p218_p6, %p55_p1 }
  0x1a   : > { %p3195_p9 = por %p224_p7, %p3856_p5  ;;  %s3201_s22 = ssub.s32 %s3044_s11, %s3911_s16 }
  0x1b   : > { %s3867_s20 = scalar_select %p3188_p8, 1, 0 }
  0x1c   : > { %s3869_s21 = scalar_select %p3195_p9, 1, 0 }
  0x1d   : > { %3868 = sst [smem:[#allocation17_spill]] %s3867_s20  ;;  %s45_s23 = sor.u32 %s44_s18, %s3201_s22 }
  0x1e   : > { %3870 = sst [smem:[#allocation18_spill]] %s3869_s21  ;;  %p46_p11 = scmp.eq.s32.totalorder %s45_s23, 0 }
  0x1f   : > { %s259_s24 = sand.u32 1, %s3028_s8   ;;  %s1985_s25 = sshll.u32 %s3044_s11, 4 }
  0x20   : > { %s3209_s14 = scalar_select %p46_p11, %s3028_s8, %s48_s17  }
  0x21   : > { %s1984_s13 = sshll.u32 %s259_s24, 6  ;;  %s268_s15 = sadd.s32 %s3040_s10, %s1985_s25 }
  0x22   : > { %s1986_s7 = sshll.u32 %s268_s15, 7  ;;  %s263_s20 = scalar_lea.vmem [#allocation5], %s1984_s13 }
  0x23   : > { %s271_s21 = sshll.u32 %s263_s20, 4  ;;  %s3215_s16 = scalar_lea.hbm %s3838_s0, %s1986_s7  ;;  %s3217_s21 = int_to_ptr.vmem [resolvable:$true] %s271_s21 }
  0x24   : > { %p3223_p13 = pnand %p3854_p12, %p3178_p3  ;;  %s3228_s13 = scalar_lea.sflag [#allocation6], %s259_s24 }
  0x25   : > { %s2862_s5 = scalar_lea.hbm %s3215_s16, 1024  ;;  %s2867_s15 = scalar_lea.hbm %s3838_s0, 4096 }
  0x26   : > { %p2863_p1 = scmp.ne.s32.totalorder %s3215_s16, %s2862_s5  ;;  %p2864_p4 = pneg %p3223_p13 }
  0x27   : > { %p2868_p3 = scmp.lt.u32.totalorder %s3215_s16, %s3838_s0  ;;  %p2869_p11 = scmp.lt.u32.totalorder %s2867_s15, %s2862_s5 }
  0x28   : > { %p2865_p6 = pnand %p2864_p4, %p2863_p1  ;;  %p2871_p2 = scmp.lt.u32.totalorder %s2862_s5, %s3215_s16 }
  0x29   : > { %p2870_p12 = por %p2869_p11, %p2868_p3 }
  0x2a   : > { %p2866_p7 = pneg %p2865_p6 }
  0x2b   : > { %p2872_p5 = por %p2871_p2, %p2870_p12 }
  0x2d   : > { %p2873_p10 = pnand %p2872_p5, %p2866_p7 }
  0x2f   : > { %2876 = shalt.err (!%p2873_p10)
}
  0x30   : > { %s2877_s20 = scalar_lea.vmem %s3217_s21, 1024  ;;  %s3050_s23 = smov [#allocation5]  }
  0x31   : > { %p2878_p1 = scmp.ne.s32.totalorder %s3217_s21, %s2877_s20  ;;  %s2882_s24 = sshll.u32 %s3050_s23, 4  ;;  %s2883_s24 = int_to_ptr.vmem [resolvable:$false] %s2882_s24 }
  0x32   : > { %s2884_s25 = scalar_lea.vmem %s2883_s24, 2048  ;;  %p2885_p9 = scmp.lt.s32.totalorder %s3217_s21, %s2883_s24 }
  0x33   : > { %p2880_p6 = pnand %p2878_p1, %p2864_p4  ;;  %p2886_p3 = scmp.lt.s32.totalorder %s2884_s25, %s2877_s20 }
  0x35   : > { %p2881_p0 = pneg %p2880_p6  ;;  %p2887_p11 = por %p2886_p3, %p2885_p9 }
  0x37   : > { %p2888_p2 = pnand %p2887_p11, %p2881_p0 }
  0x39   : > { %2891 = shalt.err (!%p2888_p2)
}
  0x3a   : > { %s3051_s5 = smov 256   ;;  %s3857_s7 = smov 128  }
  0x3b   : > { %s3053_s6 = smov 8   ;;  %p300_p5 = scmp.lt.s32.totalorder %s3048_s12, 5 }
  0x3c   : > { %2688 = dma.hbm_to_vmem [thread:$0]  (!%p3223_p13), %s3215_s16, 1024, %s3217_s21, %s3228_s13, %s3051_s5, %s3857_s7, %s3053_s6  }
  0x3d   : > { %p3872_p9 = scmp.ge.s32.totalorder %s3048_s12, 1  ;;  %s3874_s18 = sadd.s32 4294967295, %s3048_s12  }
  0x3e   : > { %p62_p12 = scmp.eq.s32.totalorder %s3874_s18, 0  ;;  %s74_s19 = sadd.s32 1, %s3016_s28 }
  0x3f   : > { %p3261_p10 = pnand %p3872_p9, %p300_p5  ;;  %p3875_p0 = scmp.eq.s32.totalorder %s3201_s22, 0 }
  0x40   : > { %p3876_p4 = scmp.ne.s32.totalorder %s3024_s30, %s3020_s29  ;;  %p81_p1 = scmp.ne.s32.totalorder %s3016_s28, %s3012_s27 }
  0x41   : > { %s3271_s20 = scalar_select %p3875_p0, %s3016_s28, %s74_s19  }
  0x42   : > { %p3276_p7 = por %p62_p12, %p3876_p4  ;;  %p87_p13 = scmp.ne.s32.totalorder %s3012_s27, %s3008_s26 }
  0x43   : > { %s281_s16 = sand.u32 1, %s3016_s28   ;;  %p3878_p6 = scmp.eq.s32.totalorder %s3048_s12, 0 }
  0x44   : > { %s3877_s23 = scalar_select %p3276_p7, 1, 0 }
  0x45   : > { %p83_p3 = por %p81_p1, %p3878_p6  ;;  %p3287_p11 = por %p87_p13, %p62_p12 }
  0x46   : > { %s1987_s17 = sshll.u32 %s281_s16, 8  ;;  %s2089_s13 = sshll.u32 %s3044_s11, 12 }
  0x47   : > { %s3879_s21 = scalar_select %p3287_p11, 1, 0 }
  0x48   : > { %s3295_s25 = scalar_lea.hbm %s3839_s1, %s2089_s13  ;;  %s285_s5 = scalar_lea.vmem [#allocation8], %s1987_s17 }
  0x49   : > { %s292_s26 = sshll.u32 %s285_s5, 4  ;;  %p3880_p2 = scmp.lt.s32.totalorder %s3048_s12, 4  ;;  %s3297_s26 = int_to_ptr.vmem [resolvable:$true] %s292_s26 }
  0x4a   : > { %s3305_s19 = scalar_lea.sflag [#allocation9], %s281_s16  ;;  %s2892_s24 = scalar_lea.hbm %s3295_s25, 4096 }
  0x4b   : > { %p3301_p5 = pnand %p3880_p2, %p83_p3  ;;  %p2893_p9 = scmp.ne.s32.totalorder %s3295_s25, %s2892_s24 }
  0x4c   : > { %s2897_s22 = scalar_lea.hbm %s3839_s1, 8192  ;;  %p2898_p1 = scmp.lt.u32.totalorder %s3295_s25, %s3839_s1 }
  0x4d   : > { %p2894_p12 = pneg %p3301_p5  ;;  %p2899_p13 = scmp.lt.u32.totalorder %s2897_s22, %s2892_s24 }
  0x4e   : > { %p2901_p3 = scmp.lt.u32.totalorder %s2892_s24, %s3295_s25 }
  0x4f   : > { %p2895_p0 = pnand %p2894_p12, %p2893_p9  ;;  %p2900_p6 = por %p2899_p13, %p2898_p1 }
  0x51   : > { %p2896_p4 = pneg %p2895_p0  ;;  %p2902_p2 = por %p2901_p3, %p2900_p6 }
  0x53   : > { %p2903_p8 = pnand %p2902_p2, %p2896_p4 }
  0x55   : > { %2906 = shalt.err (!%p2903_p8)
}
  0x56   : > { %s2907_s16 = scalar_lea.vmem %s3297_s26, 4096  ;;  %s3054_s17 = smov [#allocation8]  }
  0x57   : > { %p2908_p9 = scmp.ne.s32.totalorder %s3297_s26, %s2907_s16  ;;  %s2912_s13 = sshll.u32 %s3054_s17, 4  ;;  %s2913_s13 = int_to_ptr.vmem [resolvable:$false] %s2912_s13 }
  0x58   : > { %s2914_s7 = scalar_lea.vmem %s2913_s13, 8192  ;;  %p2915_p7 = scmp.lt.s32.totalorder %s3297_s26, %s2913_s13 }
  0x59   : > { %p2910_p0 = pnand %p2908_p9, %p2894_p12  ;;  %p2916_p1 = scmp.lt.s32.totalorder %s2914_s7, %s2907_s16 }
  0x5b   : > { %p2911_p11 = pneg %p2910_p0  ;;  %p2917_p13 = por %p2916_p1, %p2915_p7 }
  0x5d   : > { %p2918_p6 = pnand %p2917_p13, %p2911_p11 }
  0x5f   : > { %2921 = shalt.err (!%p2918_p6)
}
  0x60   : > { %s3882_s24 = smov 128   ;;  %304 = sbr.rel (%p3261_p10) target bundleno = 1827 (0x723), region = 48 }
  0x61   : > { %2691 = dma.hbm_to_vmem [thread:$0]  (!%p3301_p5), %s3295_s25, 4096, %s3297_s26, %s3305_s19, %s3882_s24, %s3882_s24, %s3053_s6  }
  0x62   : > { %s3339_s22 = sand.u32 (!%p3261_p10), 1, %s3024_s30   ;;  %p3883_p8 = scmp.ne.s32.totalorder (!%p3261_p10), %s3877_s23, 0 }
  0x63   : > { %s1991_s5 = sshll.u32 (!%p3261_p10), %s3339_s22, 6  ;;  %s307_s16 = scalar_lea.sflag (!%p3261_p10), [#allocation6], %s3339_s22 }
  0x64   : > { %s3343_s17 = scalar_lea.vmem (!%p3261_p10), [#allocation5], %s1991_s5 }
  0x67   : > { %2995 = dma.done.wait (%p3883_p8), %s307_s16, 1024  }
  0x68   : > { %2997 = vsyncadd (%p3883_p8), %s307_s16, 4294966272  ;;  %s315_s6 = sand.u32 1, %s3012_s27   ;;  %p3884_p10 = scmp.ne.s32.totalorder %s3879_s21, 0 }
  0x69   : > { %s1992_s15 = sshll.u32 %s315_s6, 8  ;;  %s316_s25 = scalar_lea.sflag [#allocation9], %s315_s6 }
  0x6a   : > { %s3350_s26 = scalar_lea.vmem [#allocation8], %s1992_s15 }
  0x6b   : > { %2999 = dma.done.wait (%p3884_p10), %s316_s25, 4096  }
  0x6c   : > { %3001 = vsyncadd (%p3884_p10), %s316_s25, 4294963200  ;;  %s3356_s18 = scalar_lea.vmem [#allocation10], %s1991_s5  ;;  %p1994_p7 = scmp.ne.s32.totalorder %s3032_s9, 0 }
  0x6d   : > { %v364_v0 = vld [vmem:[%s3350_s26] sm:$0xff] (!%p1994_p7)  ;;  %v365_v1 = vld [vmem:[%s3350_s26 + $0x8] sm:$0xff] (!%p1994_p7)  ;;  %v366_v2 = vld [vmem:[%s3350_s26 + $0x10] sm:$0xff] (!%p1994_p7)  ;;  %v3055_v3 = vmov (!%p1994_p7), 0.0|0.0   ;;  %vm3056_vm0 = vmmov (!%p1994_p7), 0   ;;  %v3057_v6 = vmov (!%p1994_p7), 0.0  }
  0x6e   : > { %358 = sbr.rel (%p1994_p7) target bundleno = 396 (0x18c), region = 60  ;;  %2499 = vmatprep.subr.bf16.mxu0 (!%p1994_p7), %v3055_v3  ;;  %v2500_v4 = vpack.c.bf16 (!%p1994_p7), %v365_v1, %v364_v0  ;;  %v367_v5 = vld [vmem:[%s3350_s26 + $0x18] sm:$0xff] (!%p1994_p7)  ;;  %2248 = vmatprep.mubr.msk.f32.mxu0 (!%p1994_p7), %vm3056_vm0, %v3057_v6  ;;  %v368_v8 = vld [vmem:[%s3350_s26 + $0x20] sm:$0xff] (!%p1994_p7)  ;;  %v369_v9 = vld [vmem:[%s3350_s26 + $0x28] sm:$0xff] (!%p1994_p7)  ;;  %vm372_vm1 = vcmask (!%p1994_p7), 523264  }
  0x6f   : > { %v2503_v7 = vpack.c.bf16 (!%p1994_p7), %v367_v5, %v366_v2  ;;  %v3371_v10 = vld [vmem:[%s3842_s4] sm:$0xff] (!%p1994_p7)  ;;  %v2506_v11 = vpack.c.bf16 (!%p1994_p7), %v369_v9, %v368_v8  ;;  %v370_v12 = vld [vmem:[%s3350_s26 + $0x30] sm:$0xff] (!%p1994_p7)  ;;  %v2000_v15 = vld [vmem:[%s3350_s26 + $0x40] sm:$0xff] (!%p1994_p7) }
  0x70   : > { %2501 = vmatpush3.bf16.msra.mxu0 (!%p1994_p7), %v2500_v4  ;;  %2512 = vmatprep.subr.bf16.mxu1 (!%p1994_p7), %v2500_v4  ;;  %v371_v13 = vld [vmem:[%s3350_s26 + $0x38] sm:$0xff] (!%p1994_p7)  ;;  %v2001_v16 = vld [vmem:[%s3350_s26 + $0x48] sm:$0xff] (!%p1994_p7)  ;;  %v2002_v18 = vld [vmem:[%s3350_s26 + $0x50] sm:$0xff] (!%p1994_p7) }
  0x71   : > { %2514 = vmatpush3.bf16.msra.mxu1 (!%p1994_p7), %v2500_v4  ;;  %2502 = vmatprep.subr.bf16.mxu0 (!%p1994_p7), %v3055_v3  ;;  %v2509_v14 = vpack.c.bf16 (!%p1994_p7), %v371_v13, %v370_v12  ;;  %v2528_v17 = vpack.c.bf16 (!%p1994_p7), %v2001_v16, %v2000_v15  ;;  %v2003_v19 = vld [vmem:[%s3350_s26 + $0x58] sm:$0xff] (!%p1994_p7)  ;;  %v3393_v21 = vld [vmem:[%s3842_s4 + $0x8] sm:$0xff] (!%p1994_p7)  ;;  %v2005_v24 = vld [vmem:[%s3350_s26 + $0x68] sm:$0xff] (!%p1994_p7) }
  0x72   : > { %2516 = vmatprep.subr.bf16.mxu1 (!%p1994_p7), %v2503_v7  ;;  %2267 = vmatprep.mubr.msk.f32.mxu1 (!%p1994_p7), %vm372_vm1, %v3371_v10  ;;  %v3387_v20 = vld [vmem:[%s3841_s3] sm:$0xff] (!%p1994_p7)  ;;  %v2531_v22 = vpack.c.bf16 (!%p1994_p7), %v2003_v19, %v2002_v18  ;;  %v2004_v23 = vld [vmem:[%s3350_s26 + $0x60] sm:$0xff] (!%p1994_p7)  ;;  %v3402_v25 = vld [vmem:[%s3842_s4 + $0x10] sm:$0xff] (!%p1994_p7) }
  0x73   : > { %v3410_v26 = vld [vmem:[%s3842_s4 + $0x18] sm:$0xff] (!%p1994_p7)  ;;  %v2534_v27 = vpack.c.bf16 (!%p1994_p7), %v2005_v24, %v2004_v23  ;;  %v2007_v29 = vld [vmem:[%s3350_s26 + $0x78] sm:$0xff] (!%p1994_p7)  ;;  %v2013_v31 = vld [vmem:[%s3350_s26 + $0x80] sm:$0xff] (!%p1994_p7) }
  0x74   : > { %2504 = vmatpush3.bf16.msra.mxu0 (!%p1994_p7), %v2503_v7  ;;  %v2006_v28 = vld [vmem:[%s3350_s26 + $0x70] sm:$0xff] (!%p1994_p7)  ;;  %v2014_v32 = vld [vmem:[%s3350_s26 + $0x88] sm:$0xff] (!%p1994_p7)  ;;  %v2016_v35 = vld [vmem:[%s3350_s26 + $0x98] sm:$0xff] (!%p1994_p7) }
  0x75   : > { %2518 = vmatpush3.bf16.msra.mxu1 %v2503_v7  ;;  %2505 = vmatprep.subr.bf16.mxu0 %v3055_v3  ;;  %v2537_v30 = vpack.c.bf16 %v2007_v29, %v2006_v28  ;;  %v2556_v33 = vpack.c.bf16 %v2014_v32, %v2013_v31  ;;  %v2015_v34 = vld [vmem:[%s3350_s26 + $0x90] sm:$0xff]  ;;  %v2017_v37 = vld [vmem:[%s3350_s26 + $0xa0] sm:$0xff]  ;;  %v2018_v38 = vld [vmem:[%s3350_s26 + $0xa8] sm:$0xff] }
  0x76   : > { %2520 = vmatprep.subr.bf16.mxu1 %v2506_v11  ;;  %v2559_v36 = vpack.c.bf16 %v2016_v35, %v2015_v34  ;;  %v2562_v39 = vpack.c.bf16 %v2018_v38, %v2017_v37  ;;  %v2019_v40 = vld [vmem:[%s3350_s26 + $0xb0] sm:$0xff]  ;;  %v2020_v41 = vld [vmem:[%s3350_s26 + $0xb8] sm:$0xff]  ;;  %v2026_v43 = vld [vmem:[%s3350_s26 + $0xc0] sm:$0xff] }
  0x77   : > { %v2565_v42 = vpack.c.bf16 %v2020_v41, %v2019_v40  ;;  %v2027_v44 = vld [vmem:[%s3350_s26 + $0xc8] sm:$0xff]  ;;  %v2028_v46 = vld [vmem:[%s3350_s26 + $0xd0] sm:$0xff]  ;;  %v2029_v47 = vld [vmem:[%s3350_s26 + $0xd8] sm:$0xff] }
  0x78   : > { %2507 = vmatpush3.bf16.msra.mxu0 %v2506_v11  ;;  %v2584_v45 = vpack.c.bf16 %v2027_v44, %v2026_v43  ;;  %v2587_v48 = vpack.c.bf16 %v2029_v47, %v2028_v46  ;;  %v2030_v49 = vld [vmem:[%s3350_s26 + $0xe0] sm:$0xff]  ;;  %v2031_v50 = vld [vmem:[%s3350_s26 + $0xe8] sm:$0xff]  ;;  %v2032_v52 = vld [vmem:[%s3350_s26 + $0xf0] sm:$0xff] }
  0x79   : > { %2522 = vmatpush3.bf16.msra.mxu1 %v2506_v11  ;;  %2508 = vmatprep.subr.bf16.mxu0 %v3055_v3  ;;  %v2590_v51 = vpack.c.bf16 %v2031_v50, %v2030_v49  ;;  %v2033_v53 = vld [vmem:[%s3350_s26 + $0xf8] sm:$0xff] }
  0x7a   : > { %2524 = vmatprep.subr.bf16.mxu1 %v2509_v14  ;;  %v2593_v54 = vpack.c.bf16 %v2033_v53, %v2032_v52 }
  0x7c   : > { %2510 = vmatpush3.bf16.msra.mxu0 %v2509_v14 }
  0x7d   : > { %2526 = vmatpush3.bf16.msra.mxu1 %v2509_v14  ;;  %2527 = vmatprep.subr.bf16.mxu0 %v3055_v3 }
  0x7e   : > { %2540 = vmatprep.subr.bf16.mxu1 %v2528_v17 }
  0x7f   : > { %2249 = vmatmul.mubr.msk.f32.vlgmr.msra.gmra.mrb[0].mxu0 %vm372_vm1, %v3387_v20 }
  0x80   : > { %2268 = vmatmul.mubr.msk.f32.vlgmr.msra.gmra.mrb[0].mxu1 %vm372_vm1, %v3393_v21  ;;  %2529 = vmatpush3.bf16.msra.mxu0 %v2528_v17 }
  0x81   : > { %2542 = vmatpush3.bf16.msra.mxu1 %v2528_v17  ;;  %2530 = vmatprep.subr.bf16.mxu0 %v3055_v3 }
  0x82   : > { %2544 = vmatprep.subr.bf16.mxu1 %v2531_v22  ;;  %2270 = vmatprep.mubr.msk.f32.mxu1 %vm372_vm1, %v3402_v25 }
  0x83   : > { %2289 = vmatprep.mubr.msk.f32.mxu0 %vm3056_vm0, %v3057_v6 }
  0x84   : > { %2532 = vmatpush3.bf16.msra.mxu0 %v2531_v22  ;;  %2271 = vmatmul.mubr.msk.f32.gmra.mrb[2].mxu1 %vm372_vm1, %v3410_v26 }
  0x85   : > { %2546 = vmatpush3.bf16.msra.mxu1 %v2531_v22  ;;  %2533 = vmatprep.subr.bf16.mxu0 %v3055_v3 }
  0x86   : > { %2548 = vmatprep.subr.bf16.mxu1 %v2534_v27  ;;  %2308 = vmatprep.mubr.msk.f32.mxu1 %vm372_vm1, %v3371_v10 }
  0x88   : > { %2535 = vmatpush3.bf16.msra.mxu0 %v2534_v27 }
  0x89   : > { %2550 = vmatpush3.bf16.msra.mxu1 %v2534_v27  ;;  %2536 = vmatprep.subr.bf16.mxu0 %v3055_v3 }
  0x8a   : > { %2552 = vmatprep.subr.bf16.mxu1 %v2537_v30 }
  0x8c   : > { %2538 = vmatpush3.bf16.msra.mxu0 %v2537_v30 }
  0x8d   : > { %2554 = vmatpush3.bf16.msra.mxu1 %v2537_v30  ;;  %2555 = vmatprep.subr.bf16.mxu0 %v3055_v3 }
  0x8e   : > { %2568 = vmatprep.subr.bf16.mxu1 %v2556_v33 }
  0x8f   : > { %2290 = vmatmul.mubr.msk.f32.vlgmr.msra.gmra.mrb[2].mxu0 %vm372_vm1, %v3387_v20 }
  0x90   : > { %2309 = vmatmul.mubr.msk.f32.vlgmr.msra.gmra.mrb[4].mxu1 %vm372_vm1, %v3393_v21  ;;  %2557 = vmatpush3.bf16.msra.mxu0 %v2556_v33 }
  0x91   : > { %2570 = vmatpush3.bf16.msra.mxu1 %v2556_v33  ;;  %2311 = vmatprep.mubr.msk.f32.mxu1 %vm372_vm1, %v3402_v25 }
  0x92   : > { %2558 = vmatprep.subr.bf16.mxu0 %v3055_v3  ;;  %2572 = vmatprep.subr.bf16.mxu1 %v2559_v36 }
  0x93   : > { %2330 = vmatprep.mubr.msk.f32.mxu0 %vm3056_vm0, %v3057_v6 }
  0x94   : > { %2312 = vmatmul.mubr.msk.f32.gmra.mrb[6].mxu1 %vm372_vm1, %v3410_v26  ;;  %2560 = vmatpush3.bf16.msra.mxu0 %v2559_v36 }
  0x95   : > { %2574 = vmatpush3.bf16.msra.mxu1 %v2559_v36  ;;  %2561 = vmatprep.subr.bf16.mxu0 %v3055_v3 }
  0x96   : > { %2576 = vmatprep.subr.bf16.mxu1 %v2562_v39  ;;  %2349 = vmatprep.mubr.msk.f32.mxu1 %vm372_vm1, %v3371_v10 }
  0x98   : > { %2563 = vmatpush3.bf16.msra.mxu0 %v2562_v39 }
  0x99   : > { %2578 = vmatpush3.bf16.msra.mxu1 %v2562_v39  ;;  %2564 = vmatprep.subr.bf16.mxu0 %v3055_v3 }
  0x9a   : > { %2580 = vmatprep.subr.bf16.mxu1 %v2565_v42 }
  0x9c   : > { %2566 = vmatpush3.bf16.msra.mxu0 %v2565_v42 }
  0x9d   : > { %2582 = vmatpush3.bf16.msra.mxu1 %v2565_v42  ;;  %2583 = vmatprep.subr.bf16.mxu0 %v3055_v3 }
  0x9e   : > { %2596 = vmatprep.subr.bf16.mxu1 %v2584_v45 }
  0x9f   : > { %2331 = vmatmul.mubr.msk.f32.vlgmr.msra.gmra.mrb[4].mxu0 %vm372_vm1, %v3387_v20 }
  0xa0   : > { %2350 = vmatmul.mubr.msk.f32.vlgmr.msra.gmra.mrb[8].mxu1 %vm372_vm1, %v3393_v21  ;;  %2585 = vmatpush3.bf16.msra.mxu0 %v2584_v45 }
  0xa1   : > { %2598 = vmatpush3.bf16.msra.mxu1 %v2584_v45  ;;  %2352 = vmatprep.mubr.msk.f32.mxu1 %vm372_vm1, %v3402_v25 }
  0xa2   : > { %2586 = vmatprep.subr.bf16.mxu0 %v3055_v3  ;;  %2600 = vmatprep.subr.bf16.mxu1 %v2587_v48 }
  0xa3   : > { %2371 = vmatprep.mubr.msk.f32.mxu0 %vm3056_vm0, %v3057_v6 }
  0xa4   : > { %2353 = vmatmul.mubr.msk.f32.gmra.mrb[10].mxu1 %vm372_vm1, %v3410_v26  ;;  %2588 = vmatpush3.bf16.msra.mxu0 %v2587_v48 }
  0xa5   : > { %2602 = vmatpush3.bf16.msra.mxu1 %v2587_v48  ;;  %2589 = vmatprep.subr.bf16.mxu0 %v3055_v3 }
  0xa6   : > { %2604 = vmatprep.subr.bf16.mxu1 %v2590_v51  ;;  %2390 = vmatprep.mubr.msk.f32.mxu1 %vm372_vm1, %v3371_v10 }
  0xa8   : > { %2591 = vmatpush3.bf16.msra.mxu0 %v2590_v51 }
  0xa9   : > { %2606 = vmatpush3.bf16.msra.mxu1 %v2590_v51  ;;  %2592 = vmatprep.subr.bf16.mxu0 %v3055_v3 }
  0xaa   : > { %2608 = vmatprep.subr.bf16.mxu1 %v2593_v54 }
  0xac   : > { %2594 = vmatpush3.bf16.msra.mxu0 %v2593_v54 }
  0xad   : > { %2610 = vmatpush3.bf16.msra.mxu1 %v2593_v54 }
  0xaf   : > { %2372 = vmatmul.mubr.msk.f32.vlgmr.msra.gmra.mrb[6].mxu0 %vm372_vm1, %v3387_v20 }
  0xb0   : > { %2391 = vmatmul.mubr.msk.f32.vlgmr.msra.gmra.mrb[12].mxu1 %vm372_vm1, %v3393_v21 }
  0xb1   : > { %2393 = vmatprep.mubr.msk.f32.mxu1 %vm372_vm1, %v3402_v25 }
  0xb4   : > { %2394 = vmatmul.mubr.msk.f32.gmra.mrb[14].mxu1 %vm372_vm1, %v3410_v26 }
 0x152   : > { %v442_v55 = vpop.f32.mrb[0].mxu0 }
 0x153   : > { %v2269_v56 = vpop.f32.mrb[0].mxu1  ;;  %v2250_v57 = vpop.f32.mrb[1].mxu0 }
 0x154   : > { %v524_v58 = vpop.f32.mrb[1].mxu1 }
 0x157   : > { %v2272_v59 = vpop.f32.mrb[2].mxu1 }
 0x158   : > { %v534_v60 = vpop.f32.mrb[3].mxu1 }
 0x162   : > { %v618_v61 = vpop.f32.mrb[2].mxu0 }
 0x163   : > { %v622_v62 = vmax.f32 %v442_v55, %v618_v61  ;;  %v2310_v63 = vpop.f32.mrb[4].mxu1  ;;  %v2291_v0 = vpop.f32.mrb[3].mxu0 }
 0x164   : > { %v709_v1 = vmax.f32 %v2269_v56, %v2310_v63  ;;  %v689_v2 = vpop.f32.mrb[5].mxu1 }
 0x165   : > { %v708_v3 = vmax.f32 %v524_v58, %v689_v2 }
 0x167   : > { %v2313_v4 = vpop.f32.mrb[6].mxu1 }
 0x168   : > { %v711_v5 = vmax.f32 %v2272_v59, %v2313_v4  ;;  %v699_v6 = vpop.f32.mrb[7].mxu1 }
 0x169   : > { %v710_v7 = vmax.f32 %v534_v60, %v699_v6 }
 0x172   : > { %v787_v8 = vpop.f32.mrb[4].mxu0 }
 0x173   : > { %v791_v9 = vmax.f32 %v622_v62, %v787_v8  ;;  %v2351_v10 = vpop.f32.mrb[8].mxu1  ;;  %v2332_v11 = vpop.f32.mrb[5].mxu0 }
 0x174   : > { %v878_v12 = vmax.f32 %v709_v1, %v2351_v10  ;;  %v858_v13 = vpop.f32.mrb[9].mxu1 }
 0x175   : > { %v877_v14 = vmax.f32 %v708_v3, %v858_v13 }
 0x177   : > { %v2354_v15 = vpop.f32.mrb[10].mxu1 }
 0x178   : > { %v880_v16 = vmax.f32 %v711_v5, %v2354_v15  ;;  %v868_v17 = vpop.f32.mrb[11].mxu1 }
 0x179   : > { %v879_v18 = vmax.f32 %v710_v7, %v868_v17 }
 0x182   : > { %v956_v19 = vpop.f32.mrb[6].mxu0 }
 0x183   : > { %v960_v20 = vmax.f32 %v791_v9, %v956_v19  ;;  %v2392_v21 = vpop.f32.mrb[12].mxu1  ;;  %v2373_v22 = vpop.f32.mrb[7].mxu0 }
 0x184   : > { %v1047_v23 = vmax.f32 %v878_v12, %v2392_v21  ;;  %v1027_v24 = vpop.f32.mrb[13].mxu1 }
 0x185   : > { %1050 = vst.msk [vmem:[#allocation2] sm:$0xff] %vm372_vm1, %v960_v20  ;;  %v1046_v25 = vmax.f32 %v877_v14, %v1027_v24 }
 0x186   : > { %1052 = vst.msk [vmem:[#allocation3 + $0x8] sm:$0xff] %vm372_vm1, %v1047_v23 }
 0x187   : > { %1051 = vst.msk [vmem:[#allocation3] sm:$0xff] %vm372_vm1, %v1046_v25  ;;  %v2395_v26 = vpop.f32.mrb[14].mxu1 }
 0x188   : > { %v1049_v27 = vmax.f32 %v880_v16, %v2395_v26  ;;  %v1037_v28 = vpop.f32.mrb[15].mxu1 }
 0x189   : > { %v1048_v29 = vmax.f32 %v879_v18, %v1037_v28 }
 0x18a   : > { %1054 = vst.msk [vmem:[#allocation3 + $0x18] sm:$0xff] %vm372_vm1, %v1049_v27 }
 0x18b   : > { %1053 = vst.msk [vmem:[#allocation3 + $0x10] sm:$0xff] %vm372_vm1, %v1048_v29 }
 0x18c PF: > { %v3486_v30 = vld [vmem:[%s3343_s17] sm:$0xff]  ;;  %v3489_v31 = vld [vmem:[%s3343_s17 + $0x8] sm:$0xff]  ;;  %v3492_v32 = vld [vmem:[%s3343_s17 + $0x10] sm:$0xff]  ;;  %v3058_v33 = vmov 0.0|0.0   ;;  %vm3059_vm2 = vmmov 0   ;;  %v3060_v36 = vmov 0.0  }
 0x18d   : > { %2611 = vmatprep.subr.bf16.mxu0 %v3058_v33  ;;  %v2612_v34 = vpack.c.bf16 %v3489_v31, %v3486_v30  ;;  %v3497_v35 = vld [vmem:[%s3343_s17 + $0x18] sm:$0xff]  ;;  %2412 = vmatprep.mubr.msk.f32.mxu0 %vm3059_vm2, %v3060_v36  ;;  %v3502_v38 = vld [vmem:[%s3343_s17 + $0x20] sm:$0xff]  ;;  %v3505_v39 = vld [vmem:[%s3343_s17 + $0x28] sm:$0xff]  ;;  %vm1064_vm3 = vcmask 523264   ;;  %vm1171_vm4 = vcmask 64512   ;;  %s3887_s21 = sld [smem:[#allocation19_spill]] }
 0x18e   : > { %v2615_v37 = vpack.c.bf16 %v3497_v35, %v3492_v32  ;;  %v2618_v40 = vpack.c.bf16 %v3505_v39, %v3502_v38  ;;  %v3510_v41 = vld [vmem:[%s3343_s17 + $0x30] sm:$0xff]  ;;  %v3513_v42 = vld [vmem:[%s3343_s17 + $0x38] sm:$0xff]  ;;  %vm3666_vm5 = vmpackc.low %vm1064_vm3, %vm1064_vm3  ;;  %vm1698_vm6 = vcmask 261120   ;;  %s3888_s19 = sld [smem:[#allocation14_spill]]  ;;  %s1828_s24 = sld [smem:[#allocation4]] }
 0x18f   : > { %2613 = vmatpush3.bf16.msra.mxu0 %v2612_v34  ;;  %v2621_v43 = vpack.c.bf16 %v3513_v42, %v3510_v41  ;;  %v1063_v44 = vld [vmem:[%s3840_s2] sm:$0xff]  ;;  %s3889_s15 = sld [smem:[#allocation17_spill]]  ;;  %s1869_s25 = sshll.u32 %s3356_s18, 4  ;;  %s3772_s25 = int_to_ptr.vmem [resolvable:$true] %s1869_s25 }
 0x190   : > { %2614 = vmatprep.subr.bf16.mxu0 %v3058_v33  ;;  %v1138_v47 = vld [vmem:[#allocation2] sm:$0xff]  ;;  %s3890_s17 = sld [smem:[#allocation20_spill]]  ;;  %s2922_s13 = scalar_lea.vmem %s3772_s25, 1024 }
 0x191   : > { %p2923_p11 = scmp.ne.s32.totalorder %s3772_s25, %s2922_s13  ;;  %s3061_s7 = smov [#allocation10]  }
 0x193   : > { %2616 = vmatpush3.bf16.msra.mxu0 %v2615_v37 }
 0x194   : > { %2617 = vmatprep.subr.bf16.mxu0 %v3058_v33  ;;  %s2085_s5 = sshll.u32 %s3888_s19, 4  ;;  %s1855_s19 = scalar_lea.sflag [#allocation7], %s3339_s22 }
 0x195   : > { %s1866_s16 = sadd.s32 %s3032_s9, %s2085_s5  ;;  %p3891_p5 = scmp.ne.s32.totalorder %s3889_s15, 0 }
 0x196   : > { %s2086_s6 = sshll.u32 %s1866_s16, 7 }
 0x197   : > { %2619 = vmatpush3.bf16.msra.mxu0 %v2618_v40  ;;  %s3769_s23 = scalar_lea.hbm %s3890_s17, %s2086_s6  ;;  %p2924_p12 = pnand %p2923_p11, %p3891_p5 }
 0x198   : > { %2620 = vmatprep.subr.bf16.mxu0 %v3058_v33 }
 0x199   : > { %p2925_p4 = pneg %p2924_p12 }
 0x19b   : > { %2622 = vmatpush3.bf16.msra.mxu0 %v2621_v43 }
 0x19c   : > { %2415 = vmatprep.subr.mxu0 %v1138_v47 }
 0x19e   : > { %2413 = vmatmul.mubr.msk.f32.vlgmr.msra.gmra.mrb[0].mxu0 %vm1064_vm3, %v1063_v44 }
 0x19f   : > { %2416 = vmatpush3.msra.mxu0 %v1138_v47 }
 0x271   : > { %v1134_v45 = vpop.f32.mrb[0].mxu0 }
 0x272   : > { %1139 = vxpose.xlu0.b32.start.end [1/1] (short) %v1134_v45, 128  ;;  %v2414_v46 = vpop.f32.mrb[1].mxu0 }
 0x2f2   : > { %v1155_v48 = vpop.trf.xlu0 }
 0x2f3   : > { %2417 = vmatprep.mubr.msk.f32.mxu0 %vm1171_vm4, %v1155_v48 }
 0x2f6   : > { %v1156_v49 = vpop.trf.xlu0 }
 0x2f7   : > { %2418 = vmatmul.mubr.msk.f32.vlgmr.msra.gmra.mrb[2].mxu0 %vm1171_vm4, %v1156_v49 }
 0x2fa   : > { %v1157_v50 = vpop.trf.xlu0 }
 0x2fb   : > { %2420 = vmatprep.mubr.msk.f32.mxu0 %vm1171_vm4, %v1157_v50 }
 0x2fe   : > { %v1158_v51 = vpop.trf.xlu0 }
 0x2ff   : > { %2421 = vmatmul.mubr.msk.f32.gmra.mrb[4].mxu0 %vm1171_vm4, %v1158_v51 }
 0x302   : > { %v1159_v52 = vpop.trf.xlu0 }
 0x303   : > { %2423 = vmatprep.mubr.msk.f32.mxu0 %vm1171_vm4, %v1159_v52 }
 0x306   : > { %v1160_v53 = vpop.trf.xlu0 }
 0x307   : > { %2424 = vmatmul.mubr.msk.f32.gmra.mrb[6].mxu0 %vm1171_vm4, %v1160_v53 }
 0x30a   : > { %v1161_v54 = vpop.trf.xlu0 }
 0x30b   : > { %2426 = vmatprep.mubr.msk.f32.mxu0 %vm1171_vm4, %v1161_v54 }
 0x30e   : > { %v1162_v55 = vpop.trf.xlu0 }
 0x30f   : > { %2427 = vmatmul.mubr.msk.f32.gmra.mrb[8].mxu0 %vm1171_vm4, %v1162_v55 }
 0x312   : > { %v1163_v56 = vpop.trf.xlu0 }
 0x313   : > { %2429 = vmatprep.mubr.msk.f32.mxu0 %vm1171_vm4, %v1163_v56 }
 0x316   : > { %v1164_v57 = vpop.trf.xlu0 }
 0x317   : > { %2430 = vmatmul.mubr.msk.f32.gmra.mrb[10].mxu0 %vm1171_vm4, %v1164_v57 }
 0x31a   : > { %v1165_v58 = vpop.trf.xlu0 }
 0x31b   : > { %2432 = vmatprep.mubr.msk.f32.mxu0 %vm1171_vm4, %v1165_v58 }
 0x31e   : > { %v1166_v59 = vpop.trf.xlu0 }
 0x31f   : > { %2433 = vmatmul.mubr.msk.f32.gmra.mrb[12].mxu0 %vm1171_vm4, %v1166_v59 }
 0x322   : > { %v1167_v60 = vpop.trf.xlu0 }
 0x323   : > { %2435 = vmatprep.mubr.msk.f32.mxu0 %vm1171_vm4, %v1167_v60 }
 0x326   : > { %v1168_v61 = vpop.trf.xlu0 }
 0x327   : > { %2436 = vmatmul.mubr.msk.f32.gmra.mrb[14].mxu0 %vm1171_vm4, %v1168_v61 }
 0x32a   : > { %v1169_v62 = vpop.trf.xlu0 }
 0x32b   : > { %2438 = vmatprep.mubr.msk.f32.mxu0 %vm1171_vm4, %v1169_v62 }
 0x32e   : > { %v1170_v63 = vpop.trf.xlu0 }
 0x32f   : > { %2439 = vmatmul.mubr.msk.f32.gmra.mrb[16].mxu0 %vm1171_vm4, %v1170_v63 }
 0x3ca   : > { %v2419_v0 = vpop.f32.mrb[2].mxu0 }
 0x3cb   : > { %v1286_v1 = vpop.f32.mrb[3].mxu0  ;;  %v1368_v2 = vsel %vm1064_vm3, %v2419_v0, -inf }
 0x3cc   : > { %1369 = vmax.xlane.f32.xlu1 %v1368_v2  ;;  %v1365_v3 = vsel %vm1064_vm3, %v1286_v1, -inf }
 0x3cd   : > { %1366 = vmax.xlane.f32.xlu0 %v1365_v3 }
 0x3d2   : > { %v2422_v4 = vpop.f32.mrb[4].mxu0 }
 0x3d3   : > { %v1296_v5 = vpop.f32.mrb[5].mxu0  ;;  %v1374_v6 = vsel %vm1064_vm3, %v2422_v4, -inf }
 0x3d4   : > { %1375 = vmax.xlane.f32.xlu1 %v1374_v6  ;;  %v1371_v7 = vsel %vm1064_vm3, %v1296_v5, -inf }
 0x3d8   : > { %1372 = vmax.xlane.f32.xlu1 %v1371_v7 }
 0x3da   : > { %v2425_v8 = vpop.f32.mrb[6].mxu0 }
 0x3db   : > { %v3541_v9 = vpop.f32.mrb[7].mxu0  ;;  %v1380_v10 = vsel %vm1064_vm3, %v2425_v8, -inf }
 0x3dc   : > { %1381 = vmax.xlane.f32.xlu1 %v1380_v10  ;;  %v1377_v11 = vsel %vm1064_vm3, %v3541_v9, -inf }
 0x3e0   : > { %1378 = vmax.xlane.f32.xlu1 %v1377_v11 }
 0x3e2   : > { %v3546_v12 = vpop.f32.mrb[8].mxu0 }
 0x3e3   : > { %v3548_v13 = vpop.f32.mrb[9].mxu0  ;;  %v1386_v14 = vsel %vm1064_vm3, %v3546_v12, -inf }
 0x3e4   : > { %1387 = vmax.xlane.f32.xlu1 %v1386_v14  ;;  %v1383_v15 = vsel %vm1064_vm3, %v3548_v13, -inf }
 0x3e8   : > { %1384 = vmax.xlane.f32.xlu1 %v1383_v15 }
 0x3ea   : > { %v3554_v16 = vpop.f32.mrb[10].mxu0 }
 0x3eb   : > { %v3556_v17 = vpop.f32.mrb[11].mxu0  ;;  %v1392_v18 = vsel %vm1064_vm3, %v3554_v16, -inf }
 0x3ec   : > { %1393 = vmax.xlane.f32.xlu1 %v1392_v18  ;;  %v1389_v19 = vsel %vm1064_vm3, %v3556_v17, -inf }
 0x3f0   : > { %1390 = vmax.xlane.f32.xlu1 %v1389_v19 }
 0x3f2   : > { %v3562_v20 = vpop.f32.mrb[12].mxu0 }
 0x3f3   : > { %v3564_v21 = vpop.f32.mrb[13].mxu0  ;;  %v1398_v22 = vsel %vm1064_vm3, %v3562_v20, -inf }
 0x3f4   : > { %1399 = vmax.xlane.f32.xlu1 %v1398_v22  ;;  %v1395_v23 = vsel %vm1064_vm3, %v3564_v21, -inf }
 0x3f8   : > { %1396 = vmax.xlane.f32.xlu1 %v1395_v23 }
 0x3fa   : > { %v3570_v24 = vpop.f32.mrb[14].mxu0 }
 0x3fb   : > { %v1404_v25 = vsel %vm1064_vm3, %v3570_v24, -inf  ;;  %v3574_v26 = vpop.f32.mrb[15].mxu0 }
 0x3fc   : > { %1405 = vmax.xlane.f32.xlu1 %v1404_v25  ;;  %v1401_v27 = vsel %vm1064_vm3, %v3574_v26, -inf }
 0x400   : > { %1402 = vmax.xlane.f32.xlu1 %v1401_v27 }
 0x402   : > { %v3578_v28 = vpop.f32.mrb[16].mxu0 }
 0x403   : > { %v3580_v29 = vpop.f32.mrb[17].mxu0  ;;  %v1410_v34 = vsel %vm1064_vm3, %v3578_v28, -inf }
 0x404   : > { %v1407_v33 = vsel %vm1064_vm3, %v3580_v29, -inf }
 0x405   : > { %1408 = vmax.xlane.f32.xlu1 %v1407_v33 }
 0x409   : > { %1411 = vmax.xlane.f32.xlu1 %v1410_v34 }
 0x459   : > { %v1370_v36 = vpop.xlane.xlu1 %1369 }
 0x45a   : > { %v1414_v37 = vsub.f32 %v2419_v0, %v1370_v36  ;;  %v1367_v40 = vpop.xlane.xlu0 %1366 }
 0x45b   : > { %v1413_v43 = vsub.f32 %v1286_v1, %v1367_v40 }
 0x45c   : > { %v1431_v44 = vmul.f32 1.442695, %v1414_v37 }
 0x45d   : > { %v1429_v45 = vmul.f32 1.442695, %v1413_v43 }
 0x45e   : > { %2798 = vpow2.f32 %v1431_v44 }
 0x45f   : > { %2800 = vpow2.f32 %v1429_v45 }
 0x461   : > { %v1376_v46 = vpop.xlane.xlu1 %1375 }
 0x462   : > { %v1416_v47 = vsub.f32 %v2422_v4, %v1376_v46 }
 0x464   : > { %v1435_v48 = vmul.f32 1.442695, %v1416_v47 }
 0x465   : > { %v1373_v49 = vpop.xlane.xlu1 %1372 }
 0x466   : > { %2802 = vpow2.f32 %v1435_v48  ;;  %v1415_v50 = vsub.f32 %v1296_v5, %v1373_v49 }
 0x468   : > { %v3586_v51 = vpop.eup %2798  ;;  %v1433_v52 = vmul.f32 1.442695, %v1415_v50 }
 0x469   : > { %v1382_v53 = vpop.xlane.xlu1 %1381  ;;  %v1464_v54 = vsel %vm1064_vm3, %v3586_v51, 0.0  ;;  %v3590_v55 = vpop.eup %2800 }
 0x46a   : > { %2804 = vpow2.f32 %v1433_v52  ;;  %v1418_v56 = vsub.f32 %v2425_v8, %v1382_v53  ;;  %1465 = vadd.xlane.f32.xlu1 %v1464_v54  ;;  %v1461_v59 = vsel %vm1064_vm3, %v3590_v55, 0.0 }
 0x46c   : > { %v1439_v57 = vmul.f32 1.442695, %v1418_v56 }
 0x46d   : > { %v1379_v58 = vpop.xlane.xlu1 %1378 }
 0x46e   : > { %2806 = vpow2.f32 %v1439_v57  ;;  %v1417_v60 = vsub.f32 %v3541_v9, %v1379_v58  ;;  %1462 = vadd.xlane.f32.xlu1 %v1461_v59 }
 0x470   : > { %v3595_v61 = vpop.eup %2802  ;;  %v1437_v62 = vmul.f32 1.442695, %v1417_v60 }
 0x471   : > { %v1388_v63 = vpop.xlane.xlu1 %1387  ;;  %v1470_v0 = vsel %vm1064_vm3, %v3595_v61, 0.0 }
 0x472   : > { %2808 = vpow2.f32 %v1437_v62  ;;  %v1420_v1 = vsub.f32 %v3546_v12, %v1388_v63  ;;  %1471 = vadd.xlane.f32.xlu1 %v1470_v0 }
 0x474   : > { %v3600_v2 = vpop.eup %2804  ;;  %v1443_v3 = vmul.f32 1.442695, %v1420_v1 }
 0x475   : > { %v1385_v4 = vpop.xlane.xlu1 %1384  ;;  %v1467_v5 = vsel %vm1064_vm3, %v3600_v2, 0.0 }
 0x476   : > { %2810 = vpow2.f32 %v1443_v3  ;;  %v1419_v6 = vsub.f32 %v3548_v13, %v1385_v4  ;;  %1468 = vadd.xlane.f32.xlu1 %v1467_v5  ;;  %v1541_v4 = vld [vmem:[#allocation3] sm:$0xff] }
 0x477   : > { %2473 = vmatprep.mubr.msk.f32.mxu1 %vm1064_vm3, %v1541_v4 }
 0x478   : > { %v3605_v7 = vpop.eup %2806  ;;  %v1441_v8 = vmul.f32 1.442695, %v1419_v6 }
 0x479   : > { %v1394_v9 = vpop.xlane.xlu1 %1393  ;;  %v1476_v10 = vsel %vm1064_vm3, %v3605_v7, 0.0 }
 0x47a   : > { %2812 = vpow2.f32 %v1441_v8  ;;  %v1422_v11 = vsub.f32 %v3554_v16, %v1394_v9  ;;  %1477 = vadd.xlane.f32.xlu1 %v1476_v10 }
 0x47c   : > { %v3610_v12 = vpop.eup %2808  ;;  %v1447_v14 = vmul.f32 1.442695, %v1422_v11 }
 0x47d   : > { %v1391_v15 = vpop.xlane.xlu1 %1390  ;;  %v1473_v18 = vsel %vm1064_vm3, %v3610_v12, 0.0 }
 0x47e   : > { %2814 = vpow2.f32 %v1447_v14  ;;  %v1421_v13 = vsub.f32 %v3556_v17, %v1391_v15  ;;  %1474 = vadd.xlane.f32.xlu1 %v1473_v18 }
 0x480   : > { %v3615_v19 = vpop.eup %2810  ;;  %v1445_v22 = vmul.f32 1.442695, %v1421_v13 }
 0x481   : > { %v1400_v23 = vpop.xlane.xlu1 %1399  ;;  %v1482_v25 = vsel %vm1064_vm3, %v3615_v19, 0.0 }
 0x482   : > { %2816 = vpow2.f32 %v1445_v22  ;;  %1483 = vadd.xlane.f32.xlu1 %v1482_v25  ;;  %v1424_v27 = vsub.f32 %v3562_v20, %v1400_v23 }
 0x484   : > { %v3619_v16 = vpop.eup %2812  ;;  %v1451_v37 = vmul.f32 1.442695, %v1424_v27 }
 0x485   : > { %v1397_v33 = vpop.xlane.xlu1 %1396  ;;  %v1479_v34 = vsel %vm1064_vm3, %v3619_v16, 0.0 }
 0x486   : > { %v1423_v17 = vsub.f32 %v3564_v21, %v1397_v33  ;;  %1480 = vadd.xlane.f32.xlu1 %v1479_v34 }
 0x488   : > { %v3625_v36 = vpop.eup %2814  ;;  %v1449_v40 = vmul.f32 1.442695, %v1423_v17 }
 0x489   : > { %v1406_v43 = vpop.xlane.xlu1 %1405  ;;  %v1488_v44 = vsel %vm1064_vm3, %v3625_v36, 0.0 }
 0x48a   : > { %2818 = vpow2.f32 %v1449_v40  ;;  %v1426_v45 = vsub.f32 %v3570_v24, %v1406_v43  ;;  %1489 = vadd.xlane.f32.xlu1 %v1488_v44 }
 0x48b   : > { %2820 = vpow2.f32 %v1451_v37 }
 0x48c   : > { %v3630_v20 = vpop.eup %2816  ;;  %v1455_v46 = vmul.f32 1.442695, %v1426_v45 }
 0x48d   : > { %v1403_v47 = vpop.xlane.xlu1 %1402  ;;  %v1485_v21 = vsel %vm1064_vm3, %v3630_v20, 0.0 }
 0x48e   : > { %2822 = vpow2.f32 %v1455_v46  ;;  %v1425_v48 = vsub.f32 %v3574_v26, %v1403_v47  ;;  %1486 = vadd.xlane.f32.xlu1 %v1485_v21 }
 0x490   : > { %v1453_v49 = vmul.f32 1.442695, %v1425_v48 }
 0x492   : > { %2824 = vpow2.f32 %v1453_v49  ;;  %v1409_v50 = vpop.xlane.xlu1 %1408 }
 0x493   : > { %v1427_v52 = vsub.f32 %v3580_v29, %v1409_v50 }
 0x494   : > { %v3636_v53 = vpop.eup %2818 }
 0x495   : > { %v1457_v24 = vmul.f32 1.442695, %v1427_v52  ;;  %v1491_v54 = vsel %vm1064_vm3, %v3636_v53, 0.0  ;;  %v3640_v56 = vpop.eup %2820 }
 0x496   : > { %1492 = vadd.xlane.f32.xlu1 %v1491_v54  ;;  %v1412_v57 = vpop.xlane.xlu1 %1411  ;;  %v1494_v29 = vsel %vm1064_vm3, %v3640_v56, 0.0 }
 0x497   : > { %2826 = vpow2.f32 %v1457_v24  ;;  %v1428_v58 = vsub.f32 %v3578_v28, %v1412_v57 }
 0x498   : > { %v3643_v26 = vpop.eup %2822 }
 0x499   : > { %v1459_v59 = vmul.f32 1.442695, %v1428_v58  ;;  %v1500_v60 = vsel %vm1064_vm3, %v3643_v26, 0.0 }
 0x49a   : > { %1501 = vadd.xlane.f32.xlu0 %v1500_v60  ;;  %1495 = vadd.xlane.f32.xlu1 %v1494_v29 }
 0x49b   : > { %2828 = vpow2.f32 %v1459_v59 }
 0x49c   : > { %v3649_v62 = vpop.eup %2824 }
 0x49d   : > { %v1497_v63 = vsel %vm1064_vm3, %v3649_v62, 0.0 }
 0x49e   : > { %1498 = vadd.xlane.f32.xlu1 %v1497_v63 }
 0x4a1   : > { %v3653_v0 = vpop.eup %2826 }
 0x4a2   : > { %v1503_v28 = vsel %vm1064_vm3, %v3653_v0, 0.0 }
 0x4a3   : > { %1504 = vadd.xlane.f32.xlu1 %v1503_v28 }
 0x4a5   : > { %v3657_v1 = vpop.eup %2828 }
 0x4a6   : > { %v1506_v3 = vsel %vm1064_vm3, %v3657_v1, 0.0 }
 0x4a7   : > { %1507 = vadd.xlane.f32.xlu0 %v1506_v3 }
 0x4f7   : > { %v1466_v5 = vpop.xlane.xlu1 %1465 }
 0x4f8   : > { %2830 = vrcp.f32 %v1466_v5 }
 0x4fb   : > { %v1463_v6 = vpop.xlane.xlu1 %1462 }
 0x4fc   : > { %2832 = vrcp.f32 %v1463_v6 }
 0x4ff   : > { %v1472_v8 = vpop.xlane.xlu1 %1471 }
 0x500   : > { %2834 = vrcp.f32 %v1472_v8 }
 0x502   : > { %v2831_v10 = vpop.eup %2830 }
 0x503   : > { %v1469_v9 = vpop.xlane.xlu1 %1468  ;;  %v1512_v18 = vmul.f32 %v2831_v10, %v3586_v51  ;;  %v1543_v10 = vld [vmem:[#allocation3 + $0x10] sm:$0xff] }
 0x504   : > { %2836 = vrcp.f32 %v1469_v9 }
 0x506   : > { %v2833_v11 = vpop.eup %2832 }
 0x507   : > { %v1478_v14 = vpop.xlane.xlu1 %1477  ;;  %v1510_v15 = vmul.f32 %v2833_v11, %v3590_v55  ;;  %v1544_v11 = vld [vmem:[#allocation3 + $0x18] sm:$0xff] }
 0x508   : > { %2838 = vrcp.f32 %v1478_v14 }
 0x509   : > { %v2623_v22 = vpack.c.bf16 %v1512_v18, %v1510_v15 }
 0x50a   : > { %v2835_v25 = vpop.eup %2834 }
 0x50b   : > { %2625 = vmatprep.subr.msk.bf16.mxu1 %vm3666_vm5, %v2623_v22  ;;  %v1475_v23 = vpop.xlane.xlu1 %1474  ;;  %v1516_v33 = vmul.f32 %v2835_v25, %v3595_v61  ;;  %v1692_v25 = vld [vmem:[%s3887_s21 + $0x10] sm:$0xff] }
 0x50c   : > { %2840 = vrcp.f32 %v1475_v23  ;;  %2628 = vmatpush3.bf16.xpose.msk.msra.mxu1 %vm3666_vm5, %v2623_v22  ;;  %v1691_v23 = vld [vmem:[%s3887_s21 + $0x8] sm:$0xff] }
 0x50e   : > { %v2837_v55 = vpop.eup %2836 }
 0x50f   : > { %v1484_v27 = vpop.xlane.xlu1 %1483  ;;  %v1514_v51 = vmul.f32 %v2837_v55, %v3600_v2  ;;  %v1693_v55 = vld [vmem:[%s3887_s21 + $0x18] sm:$0xff] }
 0x510   : > { %2842 = vrcp.f32 %v1484_v27  ;;  %v1694_v27 = vld [vmem:[%s3887_s21 + $0x20] sm:$0xff] }
 0x511   : > { %v2629_v34 = vpack.c.bf16 %v1516_v33, %v1514_v51  ;;  %v1695_v51 = vld [vmem:[%s3887_s21 + $0x28] sm:$0xff]  ;;  %v1696_v33 = vld [vmem:[%s3887_s21 + $0x30] sm:$0xff] }
 0x512   : > { %v2839_v37 = vpop.eup %2838 }
 0x513   : > { %2631 = vmatprep.subr.msk.bf16.mxu1 %vm3666_vm5, %v2629_v34  ;;  %v1481_v17 = vpop.xlane.xlu1 %1480  ;;  %v1520_v45 = vmul.f32 %v2839_v37, %v3605_v7 }
 0x514   : > { %2844 = vrcp.f32 %v1481_v17  ;;  %2634 = vmatpush3.bf16.xpose.msk.msra.mxu1 %vm3666_vm5, %v2629_v34  ;;  %v1697_v34 = vld [vmem:[%s3887_s21 + $0x38] sm:$0xff]  ;;  %v1829_v17 = vstv %s1828_s24  ;;  %s2926_s24 = sshll.u32 %s3061_s7, 4  ;;  %s2927_s24 = int_to_ptr.vmem [resolvable:$false] %s2926_s24 }
 0x515   : > { %s2928_s5 = scalar_lea.vmem %s2927_s24, 2048  ;;  %p2929_p3 = scmp.lt.s32.totalorder %s3772_s25, %s2927_s24 }
 0x516   : > { %v2841_v40 = vpop.eup %2840  ;;  %p2930_p2 = scmp.lt.s32.totalorder %s2928_s5, %s2922_s13 }
 0x517   : > { %v1490_v43 = vpop.xlane.xlu1 %1489  ;;  %v1518_v44 = vmul.f32 %v2841_v40, %v3610_v12 }
 0x518   : > { %2846 = vrcp.f32 %v1490_v43  ;;  %p2931_p9 = por %p2930_p2, %p2929_p3 }
 0x519   : > { %v2635_v2 = vpack.c.bf16 %v1520_v45, %v1518_v44 }
 0x51a   : > { %v2843_v46 = vpop.eup %2842  ;;  %p2932_p0 = pnand %p2931_p9, %p2925_p4 }
 0x51b   : > { %2637 = vmatprep.subr.msk.bf16.mxu1 %vm3666_vm5, %v2635_v2  ;;  %v1487_v61 = vpop.xlane.xlu1 %1486  ;;  %v1524_v48 = vmul.f32 %v2843_v46, %v3615_v19 }
 0x51c   : > { %2848 = vrcp.f32 %v1487_v61  ;;  %2640 = vmatpush3.bf16.xpose.msk.msra.mxu1 %vm3666_vm5, %v2635_v2 }
 0x51e   : > { %v2845_v47 = vpop.eup %2844 }
 0x51f   : > { %v1522_v21 = vmul.f32 %v2845_v47, %v3619_v16 }
 0x521   : > { %v2641_v49 = vpack.c.bf16 %v1524_v48, %v1522_v21 }
 0x522   : > { %v2847_v12 = vpop.eup %2846 }
 0x523   : > { %2643 = vmatprep.subr.msk.bf16.mxu1 %vm3666_vm5, %v2641_v49  ;;  %v1493_v7 = vpop.xlane.xlu1 %1492  ;;  %v1528_v57 = vmul.f32 %v2847_v12, %v3625_v36 }
 0x524   : > { %2646 = vmatpush3.bf16.xpose.msk.msra.mxu1 %vm3666_vm5, %v2641_v49  ;;  %2850 = vrcp.f32 %v1493_v7 }
 0x526   : > { %v2849_v50 = vpop.eup %2848 }
 0x527   : > { %v1502_v52 = vpop.xlane.xlu0 %1501  ;;  %v1496_v24 = vpop.xlane.xlu1 %1495  ;;  %v1526_v54 = vmul.f32 %v2849_v50, %v3630_v20 }
 0x528   : > { %2852 = vrcp.f32 %v1496_v24 }
 0x529   : > { %v2647_v16 = vpack.c.bf16 %v1528_v57, %v1526_v54  ;;  %2854 = vrcp.f32 %v1502_v52 }
 0x52b   : > { %2649 = vmatprep.subr.msk.bf16.mxu1 %vm3666_vm5, %v2647_v16  ;;  %v1499_v19 = vpop.xlane.xlu1 %1498 }
 0x52c   : > { %2856 = vrcp.f32 %v1499_v19  ;;  %2652 = vmatpush3.bf16.xpose.msk.msra.mxu1 %vm3666_vm5, %v2647_v16 }
 0x52e   : > { %v2851_v59 = vpop.eup %2850 }
 0x52f   : > { %v1530_v20 = vmul.f32 %v2851_v59, %v3636_v53 }
 0x530   : > { %v1505_v58 = vpop.xlane.xlu1 %1504 }
 0x531   : > { %2858 = vrcp.f32 %v1505_v58 }
 0x532   : > { %v2853_v60 = vpop.eup %2852 }
 0x533   : > { %v2855_v29 = vpop.eup %2854  ;;  %v1532_v36 = vmul.f32 %v2853_v60, %v3640_v56 }
 0x534   : > { %v1508_v63 = vpop.xlane.xlu0 %1507  ;;  %v1536_v5 = vmul.f32 %v2855_v29, %v3643_v26 }
 0x535   : > { %2860 = vrcp.f32 %v1508_v63  ;;  %v2653_v3 = vpack.c.bf16 %v1532_v36, %v1530_v20 }
 0x536   : > { %v2857_v28 = vpop.eup %2856 }
 0x537   : > { %v1534_v4 = vmul.f32 %v2857_v28, %v3649_v62  ;;  %2655 = vmatprep.subr.msk.bf16.mxu1 %vm3666_vm5, %v2653_v3  ;;  %v1542_v62 = vld [vmem:[#allocation3 + $0x8] sm:$0xff] }
 0x538   : > { %2658 = vmatpush3.bf16.xpose.msk.msra.mxu1 %vm3666_vm5, %v2653_v3 }
 0x539   : > { %v2659_v6 = vpack.c.bf16 %v1536_v5, %v1534_v4 }
 0x53b   : > { %2661 = vmatprep.subr.msk.bf16.mxu1 %vm3666_vm5, %v2659_v6  ;;  %v2859_v53 = vpop.eup %2858 }
 0x53c   : > { %v1538_v56 = vmul.f32 %v2859_v53, %v3653_v0  ;;  %v1690_v0 = vld [vmem:[%s3887_s21] sm:$0xff] }
 0x53d   : > { %2487 = vmatprep.mubr.msk.f32.mxu0 %vm1698_vm6, %v1690_v0 }
 0x53f   : > { %v2861_v8 = vpop.eup %2860 }
 0x540   : > { %v1540_v9 = vmul.f32 %v2861_v8, %v3657_v1  ;;  %2664 = vmatpush3.bf16.xpose.msk.msra.mxu1 %vm3666_vm5, %v2659_v6 }
 0x542   : > { %v2665_v26 = vpack.c.bf16 %v1540_v9, %v1538_v56 }
 0x544   : > { %2667 = vmatprep.subr.msk.bf16.mxu1 %vm3666_vm5, %v2665_v26 }
 0x548   : > { %2670 = vmatpush3.bf16.xpose.msk.msra.mxu1 %vm3666_vm5, %v2665_v26 }
 0x54f   : > { %2474 = vmatmul.mubr.msk.f32.vlgmr.msra.gmra.mrb[0].mxu1 %vm1064_vm3, %v1542_v62 }
 0x550   : > { %2476 = vmatprep.mubr.msk.f32.mxu1 %vm1064_vm3, %v1543_v10 }
 0x553   : > { %2477 = vmatmul.mubr.msk.f32.gmra.mrb[2].mxu1 %vm1064_vm3, %v1544_v11 }
 0x622   : > { %v2475_v1 = vpop.f32.mrb[0].mxu1 }
 0x623   : > { %v1671_v14 = vpop.f32.mrb[1].mxu1 }
 0x624   : > { %v2671_v15 = vpack.c.bf16 %v2475_v1, %v1671_v14 }
 0x626   : > { %2672 = vmatprep.subr.bf16.mxu0 %v2671_v15  ;;  %v2478_v18 = vpop.f32.mrb[2].mxu1 }
 0x627   : > { %2674 = vmatpush3.bf16.msra.mxu0 %v2671_v15  ;;  %v1681_v13 = vpop.f32.mrb[3].mxu1 }
 0x628   : > { %v2675_v22 = vpack.c.bf16 %v2478_v18, %v1681_v13 }
 0x62a   : > { %2676 = vmatprep.subr.bf16.mxu0 %v2675_v22 }
 0x62b   : > { %2678 = vmatpush3.bf16.msra.mxu0 %v2675_v22 }
 0x62e   : > { %2488 = vmatmul.mubr.msk.f32.vlgmr.msra.gmra.mrb[18].mxu0 %vm1698_vm6, %v1691_v23 }
 0x62f   : > { %2490 = vmatprep.mubr.msk.f32.mxu0 %vm1698_vm6, %v1692_v25 }
 0x632   : > { %2491 = vmatmul.mubr.msk.f32.gmra.mrb[20].mxu0 %vm1698_vm6, %v1693_v55 }
 0x633   : > { %2493 = vmatprep.mubr.msk.f32.mxu0 %vm1698_vm6, %v1694_v27 }
 0x636   : > { %2494 = vmatmul.mubr.msk.f32.gmra.mrb[22].mxu0 %vm1698_vm6, %v1695_v51 }
 0x637   : > { %2496 = vmatprep.mubr.msk.f32.mxu0 %vm1698_vm6, %v1696_v33 }
 0x63a   : > { %2497 = vmatmul.mubr.msk.f32.gmra.mrb[24].mxu0 %vm1698_vm6, %v1697_v34 }
 0x701   : > { %v2489_v37 = vpop.f32.mrb[18].mxu0 }
 0x702   : > { %v1831_v40 = vmul.f32 %v2489_v37, %v1829_v17  ;;  %v1789_v43 = vpop.f32.mrb[19].mxu0 }
 0x703   : > { %v1830_v44 = vmul.f32 %v1829_v17, %v1789_v43 }
 0x704   : > { %v1839_v45 = vadd.f32 %v1831_v40, %v3489_v31 }
 0x705   : > { %v1838_v2 = vadd.f32 %v1830_v44, %v3486_v30  ;;  %v2492_v61 = vpop.f32.mrb[20].mxu0 }
 0x706   : > { %1847 = vst [vmem:[%s3356_s18 + $0x8] sm:$0xff] %v1839_v45  ;;  %v1833_v46 = vmul.f32 %v2492_v61, %v1829_v17  ;;  %v1799_v47 = vpop.f32.mrb[21].mxu0 }
 0x707   : > { %1846 = vst [vmem:[%s3356_s18] sm:$0xff] %v1838_v2  ;;  %v1832_v21 = vmul.f32 %v1829_v17, %v1799_v47 }
 0x708   : > { %v1841_v48 = vadd.f32 %v1833_v46, %v3497_v35 }
 0x709   : > { %v1840_v49 = vadd.f32 %v1832_v21, %v3492_v32  ;;  %v2495_v7 = vpop.f32.mrb[22].mxu0 }
 0x70a   : > { %1849 = vst [vmem:[%s3356_s18 + $0x18] sm:$0xff] %v1841_v48  ;;  %v1835_v31 = vmul.f32 %v2495_v7, %v1829_v17  ;;  %v1809_v12 = vpop.f32.mrb[23].mxu0 }
 0x70b   : > { %1848 = vst [vmem:[%s3356_s18 + $0x10] sm:$0xff] %v1840_v49  ;;  %v1834_v30 = vmul.f32 %v1829_v17, %v1809_v12 }
 0x70c   : > { %v1843_v50 = vadd.f32 %v1835_v31, %v3505_v39 }
 0x70d   : > { %v1842_v52 = vadd.f32 %v1834_v30, %v3502_v38  ;;  %v2498_v24 = vpop.f32.mrb[24].mxu0 }
 0x70e   : > { %1851 = vst [vmem:[%s3356_s18 + $0x28] sm:$0xff] %v1843_v50  ;;  %v1837_v32 = vmul.f32 %v2498_v24, %v1829_v17  ;;  %v1819_v35 = vpop.f32.mrb[25].mxu0 }
 0x70f   : > { %1850 = vst [vmem:[%s3356_s18 + $0x20] sm:$0xff] %v1842_v52  ;;  %v1836_v54 = vmul.f32 %v1829_v17, %v1819_v35 }
 0x710   : > { %v1845_v57 = vadd.f32 %v1837_v32, %v3513_v42 }
 0x711   : > { %v1844_v38 = vadd.f32 %v1836_v54, %v3510_v41 }
 0x712   : > { %1853 = vst [vmem:[%s3356_s18 + $0x38] sm:$0xff] %v1845_v57 }
 0x713   : > { %1852 = vst [vmem:[%s3356_s18 + $0x30] sm:$0xff] %v1844_v38 }
 0x714   : > { %2935 = shalt.err (!%p2932_p0)
}
 0x715   : > { %s2936_s18 = scalar_lea.hbm %s3769_s23, 1024  ;;  %s2940_s9 = scalar_lea.hbm %s3890_s17, 4096 }
 0x716   : > { %p2937_p1 = scmp.ne.s32.totalorder %s3769_s23, %s2936_s18  ;;  %p2941_p8 = scmp.lt.u32.totalorder %s3769_s23, %s3890_s17 }
 0x717   : > { %p2942_p10 = scmp.lt.u32.totalorder %s2940_s9, %s2936_s18  ;;  %p2944_p11 = scmp.lt.u32.totalorder %s2936_s18, %s3769_s23 }
 0x718   : > { %p2938_p13 = pnand %p2937_p1, %p3891_p5 }
 0x719   : > { %p2943_p7 = por %p2942_p10, %p2941_p8 }
 0x71a   : > { %p2939_p6 = pneg %p2938_p13 }
 0x71b   : > { %p2945_p12 = por %p2944_p11, %p2943_p7 }
 0x71d   : > { %p2946_p4 = pnand %p2945_p12, %p2939_p6 }
 0x71f   : > { %2949 = shalt.err (!%p2946_p4)
}
 0x720   : > { %s3062_s13 = smov 128   ;;  %s3063_s24 = smov 256  }
 0x721   : > { %s3064_s5 = smov 8  }
 0x722   : > { %2683 = dma.vmem_to_hbm [thread:$0]  (%p3891_p5), %s3772_s25, 1024, %s3769_s23, %s1855_s19, %s3062_s13, %s3063_s24, %s3064_s5  }
 0x723 PF: > { %s3892_s16 = sld [smem:[#allocation18_spill]]  ;;  %p2697_p3 = scmp.ge.s32.totalorder %s3048_s12, 2 }
 0x724   : > { %s1884_s6 = sand.u32 1, %s3020_s29  }
 0x725   : > { %s1885_s18 = scalar_lea.sflag [#allocation7], %s1884_s6 }
 0x729   : > { %p3893_p2 = scmp.ne.s32.totalorder %s3892_s16, 0 }
 0x72b   : > { %p2693_p9 = pnand %p2697_p3, %p3893_p2 }
 0x72d   : > { %3003 = dma.done.wait (!%p2693_p9), %s1885_s18, 1024  }
 0x72e   : > { %3005 = vsyncadd (!%p2693_p9), %s1885_s18, 4294966272  ;;  %s27_s12 = sadd.s32 1, %s3048_s12   ;;  %s3894_s22 = sld [smem:[#allocation15_spill]] }
 0x72f   : > { %p24_p0 = scmp.ge.s32.totalorder %s27_s12, 6   ;;  %s3895_s15 = sld [smem:[#allocation16_spill]] }
 0x730   : > { %s3896_s26 = smov %s3012_s27  ;;  %s3897_s27 = smov %s3016_s28 }
 0x731   : > { %s3898_s28 = smov %s3271_s20  ;;  %s3899_s29 = smov %s3024_s30 }
 0x732   : > { %s3900_s30 = smov %s3028_s8  ;;  %s3901_s8 = smov %s3209_s14 }
 0x733   : > { %s3902_s9 = smov %s3040_s10  ;;  %s3903_s6 = smov %s3044_s11 }
 0x734   : > { %s3904_s10 = smov %s3894_s22  ;;  %26 = sbr.rel (!%p24_p0) target bundleno = 15 (0xf), region = 113 }
 0x735   : > { %s3905_s11 = smov %s3895_s15 }
 0x73b   :  { %1890 = vsyncpa [#allocation6], 1 }
 0x73c   :  { %1892 = vsyncpa [#allocation6 + $0x1], 1 }
 0x73d   :  { %1893 = vsyncpa [#allocation9], 1 }
 0x73e   :  { %1895 = vsyncpa [#allocation9 + $0x1], 1 }
 0x73f   :  { %1896 = vsyncpa [#allocation7], 1 }
 0x740   :  { %1898 = vsyncpa [#allocation7 + $0x1], 1 }

</bundles_post_ra>
